<compile_context>
chip_gen: v6e
topology: v6e:2x2x1
jax: 0.10.0
libtpu: 0.0.40
codegen_flags: <defaults>
</compile_context>

<pallas_src>
import functools
import math

import numpy as np
import jax
import jax.numpy as jnp
from jax.experimental import pallas as pl
from jax.experimental.pallas import tpu as pltpu


def encoder_kernel(x_ref, pe_ref, emb_w_ref, emb_b_ref, hm_exp_ref, bmask_ref,
                   wqkv_ref, wo_ref, bo_ref,
                   ln1g_ref, ln1b_ref, w1_ref, b1_ref, w2_ref, b2_ref,
                   ln2g_ref, ln2b_ref, fc_w_ref, fc_b_ref,
                   out_ref, *, num_layers, n_heads, head_dim, embed_dim, use_pe):
    f32 = jnp.float32
    E = embed_dim
    x = x_ref[...].astype(f32)                                  # (R, V), R = B*S
    R = x.shape[0]

    # Embedding_linear: Linear(V, E) + ReLU
    h = jnp.dot(x, emb_w_ref[...], preferred_element_type=f32) + emb_b_ref[...]
    h = jnp.maximum(h, 0.0)                                     # (R, E)

    if use_pe:
        h = h * jnp.sqrt(jnp.float32(E)) + pe_ref[...]

    hm_exp = hm_exp_ref[...]                                    # (H*R, E) head lane masks
    bmask = bmask_ref[...]                                      # (H*R, R) 0 / -1e30 batch mask
    inv_sqrt_d = 1.0 / math.sqrt(head_dim)

    def layer_norm(z, g, b):
        mu = jnp.mean(z, axis=-1, keepdims=True)
        var = jnp.mean((z - mu) * (z - mu), axis=-1, keepdims=True)
        return (z - mu) * jax.lax.rsqrt(var + 1e-5) * g + b

    # TODO(synk): for large num_layers switch to lax.fori_loop with dynamic
    # wqkv_ref[l] indexing; with L=2 the unrolled loop is fine for vreg pressure.
    for l in range(num_layers):
        # Fused q/k/v projection: one (R,E)x(E,3E) MXU op, then static lane slices.
        qkv = jnp.dot(h, wqkv_ref[l], preferred_element_type=f32)   # (R, 3E)
        q = qkv[:, 0:E]
        k = qkv[:, E:2 * E]
        v = qkv[:, 2 * E:3 * E]

        # Head-stacked, batch-fused attention: all heads & batches in two MXU ops.
        # Row hd*R + r of q_stack is q[r] masked to head hd's lanes, so the single
        # contraction over E gives every head's Q_h K_h^T at once; the additive
        # bmask removes cross-batch terms before softmax.
        q_stack = jnp.concatenate([q] * n_heads, axis=0) * hm_exp   # (H*R, E)
        sc = jax.lax.dot_general(q_stack, k,
                                 (((1,), (1,)), ((), ())),
                                 preferred_element_type=f32) * inv_sqrt_d
        sc = sc + bmask                                             # (H*R, R)
        sc = sc - jnp.max(sc, axis=-1, keepdims=True)
        p = jnp.exp(sc)
        p = p * pl.reciprocal(jnp.sum(p, axis=-1, keepdims=True), approx=True)

        ctx_stack = jnp.dot(p, v, preferred_element_type=f32) * hm_exp      # (H*R, E)
        # Sum the per-head contributions back into (R, E); each lane receives
        # exactly one head's value (sublane-aligned static slices, cheap VPU adds).
        ctx = ctx_stack[0:R, :]
        for hd in range(1, n_heads):
            ctx = ctx + ctx_stack[hd * R:(hd + 1) * R, :]

        attn = jnp.dot(ctx, wo_ref[l], preferred_element_type=f32) + bo_ref[l]
        n1 = layer_norm(attn + h, ln1g_ref[l], ln1b_ref[l])

        ff = jnp.dot(n1, w1_ref[l], preferred_element_type=f32) + b1_ref[l]
        ff = ff * pl.reciprocal(1.0 + jnp.exp(-ff), approx=True)    # SiLU (EUP recip)
        ff = jnp.dot(ff, w2_ref[l], preferred_element_type=f32) + b2_ref[l]
        h = layer_norm(ff + n1, ln2g_ref[l], ln2b_ref[l])

    out = jnp.dot(h, fc_w_ref[...], preferred_element_type=f32) + fc_b_ref[...] + x
    out_ref[...] = out.astype(out_ref.dtype)
    # TODO(synk): a fully lane-dense (1, B*S*O) output slab would need an
    # in-kernel (R,O)<->(R*O,) relayout; at these sizes (1 KiB total output)
    # the single masked store is cheaper than that relayout.


def transformer_encoder_occmap(x, kp, *, n_heads, use_pe):
    """x: (B, S, V) float32. kp: dict of kernel-layout parameters."""
    B, S, V = x.shape
    E = kp["emb_w"].shape[1]
    O = kp["fc_w"].shape[1]
    L = kp["wqkv"].shape[0]
    D = E // n_heads
    R = B * S

    x_flat = x.reshape(R, V)

    # (H*R, E) head lane masks: row hd*R + r selects head hd's lanes (built
    # outside the kernel so no in-kernel reshape/repeat is needed).
    hm_exp = jnp.repeat(kp["head_mask"], R, axis=0)

    # (H*R, R) additive mask: 0 within a batch, -1e30 across batches, so the
    # batch-fused softmax never mixes different batch elements.
    same_batch = jnp.kron(jnp.eye(B, dtype=jnp.float32),
                          jnp.ones((S, S), jnp.float32))             # (R, R)
    bmask = jnp.tile((same_batch - 1.0) * 1e30, (n_heads, 1))         # (H*R, R)

    # Positional-encoding table tiled over the batch rows (only read if use_pe).
    pe_tiled = jnp.tile(kp["pe"], (B, 1))                             # (R, E)

    kernel = functools.partial(encoder_kernel, num_layers=L, n_heads=n_heads,
                               head_dim=D, embed_dim=E, use_pe=use_pe)

    def full_spec(a):
        return pl.BlockSpec(a.shape, lambda i, n=a.ndim: (0,) * n)

    weights = [pe_tiled, kp["emb_w"], kp["emb_b"], hm_exp, bmask,
               kp["wqkv"], kp["wo"], kp["bo"],
               kp["ln1_g"], kp["ln1_b"], kp["w1"], kp["b1"], kp["w2"], kp["b2"],
               kp["ln2_g"], kp["ln2_b"], kp["fc_w"], kp["fc_b"]]

    out = pl.pallas_call(
        kernel,
        out_shape=jax.ShapeDtypeStruct((R, O), x.dtype),
        grid=(1,),
        in_specs=[pl.BlockSpec((R, V), lambda i: (0, 0))]
                 + [full_spec(a) for a in weights],
        out_specs=pl.BlockSpec((R, O), lambda i: (0, 0)),
        compiler_params=pltpu.CompilerParams(
            dimension_semantics=("arbitrary",)),
    )(x_flat, *weights)
    return out.reshape(B, S, O)
    # TODO(synk): for large B, split the batch into blocks over a "parallel"
    # grid axis (block-local bmask) instead of fusing all of it into one call.


# ----------------------------- pure-JAX reference ---------------------------
def reference(x, raw, *, n_heads, use_pe):
    B, S, V = x.shape
    E = raw["emb_w"].shape[1]
    D = E // n_heads
    L = raw["wq_small"].shape[0]

    def layer_norm(z, g, b):
        mu = jnp.mean(z, axis=-1, keepdims=True)
        var = jnp.mean((z - mu) ** 2, axis=-1, keepdims=True)
        return (z - mu) / jnp.sqrt(var + 1e-5) * g + b

    h = jax.nn.relu(x @ raw["emb_w"] + raw["emb_b"])
    if use_pe:
        h = h * math.sqrt(E) + raw["pe"][None]
    for l in range(L):
        r = h.reshape(B, S, n_heads, D)
        q = r @ raw["wq_small"][l]
        k = r @ raw["wk_small"][l]
        v = r @ raw["wv_small"][l]
        q, k, v = (jnp.transpose(t, (0, 2, 1, 3)) for t in (q, k, v))
        sc = (q @ jnp.swapaxes(k, -1, -2)) / math.sqrt(D)
        p = jax.nn.softmax(sc, axis=-1)
        ctx = p @ v                                            # (B, H, S, D)
        concat = jnp.transpose(ctx, (0, 2, 1, 3)).reshape(B, S, E)
        attn = concat @ raw["wo"][l] + raw["bo"][l]
        n1 = layer_norm(attn + h, raw["ln1_g"][l], raw["ln1_b"][l])
        ff = n1 @ raw["w1"][l] + raw["b1"][l]
        ff = ff * jax.nn.sigmoid(ff)
        ff = ff @ raw["w2"][l] + raw["b2"][l]
        h = layer_norm(ff + n1, raw["ln2_g"][l], raw["ln2_b"][l])
    return h @ raw["fc_w"] + raw["fc_b"] + x


# --------------------------------- main --------------------------------------
if __name__ == "__main__":
    # Small shapes consistent with the module.
    B, S, HH, WW = 2, 8, 4, 4
    V = HH * WW                       # vocab_size (flattened trailing dims)
    E = 32                            # embed_dim
    n_heads = 8
    D = E // n_heads                  # single_head_dim
    L = 2                             # num_layers
    expansion = 1                     # expansion_factor
    F = expansion * E
    O = V                             # cfg.MODEL.HEAD_INPUT (must equal V for `fc(out)+x`)
    use_pe = False                    # module default (pe=False)

    key = jax.random.PRNGKey(0)
    ks = jax.random.split(key, 16)

    def rnd(k, shape, scale=0.1):
        return scale * jax.random.normal(k, shape, jnp.float32)

    # Positional-encoding table (matches the PyTorch double loop); unused when pe=False.
    pe_np = np.zeros((S, E), np.float32)
    for pos in range(S):
        for i in range(0, E, 2):
            pe_np[pos, i] = math.sin(pos / 10000 ** (2 * i / E))
            pe_np[pos, i + 1] = math.cos(pos / 10000 ** (2 * (i + 1) / E))

    raw = {
        "emb_w": rnd(ks[0], (V, E)), "emb_b": rnd(ks[1], (E,), 0.01),
        "wq_small": rnd(ks[2], (L, D, D)),
        "wk_small": rnd(ks[3], (L, D, D)),
        "wv_small": rnd(ks[4], (L, D, D)),
        "wo": rnd(ks[5], (L, E, E)), "bo": rnd(ks[6], (L, E), 0.01),
        "ln1_g": jnp.ones((L, E), jnp.float32), "ln1_b": jnp.zeros((L, E), jnp.float32),
        "ln2_g": jnp.ones((L, E), jnp.float32), "ln2_b": jnp.zeros((L, E), jnp.float32),
        "w1": rnd(ks[7], (L, E, F)), "b1": rnd(ks[8], (L, F), 0.01),
        "w2": rnd(ks[9], (L, F, E)), "b2": rnd(ks[10], (L, E), 0.01),
        "fc_w": rnd(ks[11], (E, O)), "fc_b": rnd(ks[12], (O,), 0.01),
        "pe": jnp.asarray(pe_np),
    }

    # Kernel-layout parameters: block-diagonal q/k/v weights fused into one
    # (L, E, 3E) weight, head lane-masks, 2-D biases.
    eye_h = jnp.eye(n_heads, dtype=jnp.float32)
    blockdiag = jax.vmap(lambda w: jnp.kron(eye_h, w))
    wqkv = jnp.concatenate([blockdiag(raw["wq_small"]),
                            blockdiag(raw["wk_small"]),
                            blockdiag(raw["wv_small"])], axis=-1)      # (L, E, 3E)
    kp = {
        "pe": raw["pe"],
        "emb_w": raw["emb_w"], "emb_b": raw["emb_b"][None, :],
        "head_mask": jnp.kron(eye_h, jnp.ones((1, D), jnp.float32)),   # (H, E)
        "wqkv": wqkv,
        "wo": raw["wo"], "bo": raw["bo"][:, None, :],
        "ln1_g": raw["ln1_g"][:, None, :], "ln1_b": raw["ln1_b"][:, None, :],
        "w1": raw["w1"], "b1": raw["b1"][:, None, :],
        "w2": raw["w2"], "b2": raw["b2"][:, None, :],
        "ln2_g": raw["ln2_g"][:, None, :], "ln2_b": raw["ln2_b"][:, None, :],
        "fc_w": raw["fc_w"], "fc_b": raw["fc_b"][None, :],
    }

    # Input: (B, S, HH, WW) -> flattened to (B, S, V) as in forward()'s x.view.
    x_raw = jax.random.normal(ks[13], (B, S, HH, WW), jnp.float32)
    x = x_raw.reshape(B, S, -1)

    out = transformer_encoder_occmap(x, kp, n_heads=n_heads, use_pe=use_pe)
    out = jax.block_until_ready(out)

    ref = jax.block_until_ready(reference(x, raw, n_heads=n_heads, use_pe=use_pe))
    np.testing.assert_allclose(np.asarray(out), np.asarray(ref), rtol=2e-2, atol=2e-2)

    # TODO(synk): pe=True path is supported via `use_pe` but the module default (pe=False) is exercised here.
    print("KERNEL_OK")
</pallas_src>

<mosaic_0001>
module attributes {stable_mosaic.version = 11 : i64} {
  func.func @encoder_kernel(%arg0: i32, %arg1: memref<16x16xf32, #tpu.memory_space<vmem>>, %arg2: memref<16x32xf32, #tpu.memory_space<vmem>>, %arg3: memref<16x32xf32, #tpu.memory_space<vmem>>, %arg4: memref<1x32xf32, #tpu.memory_space<vmem>>, %arg5: memref<128x32xf32, #tpu.memory_space<vmem>>, %arg6: memref<128x16xf32, #tpu.memory_space<vmem>>, %arg7: memref<2x32x96xf32, #tpu.memory_space<vmem>>, %arg8: memref<2x32x32xf32, #tpu.memory_space<vmem>>, %arg9: memref<2x1x32xf32, #tpu.memory_space<vmem>>, %arg10: memref<2x1x32xf32, #tpu.memory_space<vmem>>, %arg11: memref<2x1x32xf32, #tpu.memory_space<vmem>>, %arg12: memref<2x32x32xf32, #tpu.memory_space<vmem>>, %arg13: memref<2x1x32xf32, #tpu.memory_space<vmem>>, %arg14: memref<2x32x32xf32, #tpu.memory_space<vmem>>, %arg15: memref<2x1x32xf32, #tpu.memory_space<vmem>>, %arg16: memref<2x1x32xf32, #tpu.memory_space<vmem>>, %arg17: memref<2x1x32xf32, #tpu.memory_space<vmem>>, %arg18: memref<32x16xf32, #tpu.memory_space<vmem>>, %arg19: memref<1x16xf32, #tpu.memory_space<vmem>>, %arg20: memref<16x16xf32, #tpu.memory_space<vmem>>) attributes {dimension_semantics = [#tpu.dimension_semantics<arbitrary>], iteration_bounds = array<i64: 1>, scalar_prefetch = 0 : i64, scratch_operands = 0 : i64, tpu.core_type = #tpu.core_type<tc>, window_params = [{pipeline_mode = #tpu.pipeline_mode<synchronous>, transform_indices = @transform_0, window_bounds = array<i64: 16, 16>}, {pipeline_mode = #tpu.pipeline_mode<synchronous>, transform_indices = @transform_1, window_bounds = array<i64: 16, 32>}, {pipeline_mode = #tpu.pipeline_mode<synchronous>, transform_indices = @transform_2, window_bounds = array<i64: 16, 32>}, {pipeline_mode = #tpu.pipeline_mode<synchronous>, transform_indices = @transform_3, window_bounds = array<i64: 1, 32>}, {pipeline_mode = #tpu.pipeline_mode<synchronous>, transform_indices = @transform_4, window_bounds = array<i64: 128, 32>}, {pipeline_mode = #tpu.pipeline_mode<synchronous>, transform_indices = @transform_5, window_bounds = array<i64: 128, 16>}, {pipeline_mode = #tpu.pipeline_mode<synchronous>, transform_indices = @transform_6, window_bounds = array<i64: 2, 32, 96>}, {pipeline_mode = #tpu.pipeline_mode<synchronous>, transform_indices = @transform_7, window_bounds = array<i64: 2, 32, 32>}, {pipeline_mode = #tpu.pipeline_mode<synchronous>, transform_indices = @transform_8, window_bounds = array<i64: 2, 1, 32>}, {pipeline_mode = #tpu.pipeline_mode<synchronous>, transform_indices = @transform_9, window_bounds = array<i64: 2, 1, 32>}, {pipeline_mode = #tpu.pipeline_mode<synchronous>, transform_indices = @transform_10, window_bounds = array<i64: 2, 1, 32>}, {pipeline_mode = #tpu.pipeline_mode<synchronous>, transform_indices = @transform_11, window_bounds = array<i64: 2, 32, 32>}, {pipeline_mode = #tpu.pipeline_mode<synchronous>, transform_indices = @transform_12, window_bounds = array<i64: 2, 1, 32>}, {pipeline_mode = #tpu.pipeline_mode<synchronous>, transform_indices = @transform_13, window_bounds = array<i64: 2, 32, 32>}, {pipeline_mode = #tpu.pipeline_mode<synchronous>, transform_indices = @transform_14, window_bounds = array<i64: 2, 1, 32>}, {pipeline_mode = #tpu.pipeline_mode<synchronous>, transform_indices = @transform_15, window_bounds = array<i64: 2, 1, 32>}, {pipeline_mode = #tpu.pipeline_mode<synchronous>, transform_indices = @transform_16, window_bounds = array<i64: 2, 1, 32>}, {pipeline_mode = #tpu.pipeline_mode<synchronous>, transform_indices = @transform_17, window_bounds = array<i64: 32, 16>}, {pipeline_mode = #tpu.pipeline_mode<synchronous>, transform_indices = @transform_18, window_bounds = array<i64: 1, 16>}, {pipeline_mode = #tpu.pipeline_mode<synchronous>, transform_indices = @transform_19, window_bounds = array<i64: 16, 16>}]} {
    %c0 = arith.constant 0 : index
    %c0_0 = arith.constant 0 : index
    %0 = vector.load %arg1[%c0, %c0_0] : memref<16x16xf32, #tpu.memory_space<vmem>>, vector<16x16xf32>
    %c0_1 = arith.constant 0 : index
    %c0_2 = arith.constant 0 : index
    %1 = vector.load %arg3[%c0_1, %c0_2] : memref<16x32xf32, #tpu.memory_space<vmem>>, vector<16x32xf32>
    %cst = arith.constant dense<0.000000e+00> : vector<16x32xf32>
    %2 = tpu.matmul %0, %1, %cst {dimension_numbers = #tpu.dot_dimension_numbers<[1], [0], [0], [1], [0, 0, 1, 1], [], []>} : vector<16x16xf32>, vector<16x32xf32>, vector<16x32xf32> -> vector<16x32xf32>
    %c0_3 = arith.constant 0 : index
    %c0_4 = arith.constant 0 : index
    %3 = vector.load %arg4[%c0_3, %c0_4] : memref<1x32xf32, #tpu.memory_space<vmem>>, vector<1x32xf32>
    %4 = vector.broadcast %3 : vector<1x32xf32> to vector<16x32xf32>
    %5 = arith.addf %2, %4 : vector<16x32xf32>
    %cst_5 = arith.constant 0.000000e+00 : f32
    %6 = vector.broadcast %cst_5 : f32 to vector<16x32xf32>
    %7 = arith.maximumf %5, %6 : vector<16x32xf32>
    %c0_6 = arith.constant 0 : index
    %c0_7 = arith.constant 0 : index
    %8 = vector.load %arg5[%c0_6, %c0_7] : memref<128x32xf32, #tpu.memory_space<vmem>>, vector<128x32xf32>
    %c0_8 = arith.constant 0 : index
    %c0_9 = arith.constant 0 : index
    %9 = vector.load %arg6[%c0_8, %c0_9] : memref<128x16xf32, #tpu.memory_space<vmem>>, vector<128x16xf32>
    %c0_10 = arith.constant 0 : index
    %c0_11 = arith.constant 0 : index
    %c0_12 = arith.constant 0 : index
    %10 = vector.load %arg7[%c0_10, %c0_11, %c0_12] : memref<2x32x96xf32, #tpu.memory_space<vmem>>, vector<1x32x96xf32>
    %11 = vector.shape_cast %10 : vector<1x32x96xf32> to vector<32x96xf32>
    %cst_13 = arith.constant dense<0.000000e+00> : vector<16x96xf32>
    %12 = tpu.matmul %7, %11, %cst_13 {dimension_numbers = #tpu.dot_dimension_numbers<[1], [0], [0], [1], [0, 0, 1, 1], [], []>} : vector<16x32xf32>, vector<32x96xf32>, vector<16x96xf32> -> vector<16x96xf32>
    %13 = vector.extract_strided_slice %12 {offsets = [0, 0], sizes = [16, 32], strides = [1, 1]} : vector<16x96xf32> to vector<16x32xf32>
    %14 = vector.extract_strided_slice %12 {offsets = [0, 32], sizes = [16, 32], strides = [1, 1]} : vector<16x96xf32> to vector<16x32xf32>
    %15 = vector.extract_strided_slice %12 {offsets = [0, 64], sizes = [16, 32], strides = [1, 1]} : vector<16x96xf32> to vector<16x32xf32>
    %16 = tpu.concatenate %13, %13, %13, %13, %13, %13, %13, %13 in 0 : vector<16x32xf32>, vector<16x32xf32>, vector<16x32xf32>, vector<16x32xf32>, vector<16x32xf32>, vector<16x32xf32>, vector<16x32xf32>, vector<16x32xf32> -> vector<128x32xf32>
    %17 = arith.mulf %16, %8 : vector<128x32xf32>
    %cst_14 = arith.constant dense<0.000000e+00> : vector<128x16xf32>
    %18 = tpu.matmul %17, %14, %cst_14 {dimension_numbers = #tpu.dot_dimension_numbers<[1], [1], [0], [0], [0, 0, 1, 0], [], []>} : vector<128x32xf32>, vector<16x32xf32>, vector<128x16xf32> -> vector<128x16xf32>
    %cst_15 = arith.constant 5.000000e-01 : f32
    %19 = vector.broadcast %cst_15 : f32 to vector<128x16xf32>
    %20 = arith.mulf %18, %19 : vector<128x16xf32>
    %21 = arith.addf %20, %9 : vector<128x16xf32>
    %cst_16 = arith.constant dense<0xFF800000> : vector<128xf32>
    %22 = vector.multi_reduction <maximumf>, %21, %cst_16 [1] : vector<128x16xf32> to vector<128xf32>
    %23 = vector.shape_cast %22 : vector<128xf32> to vector<128x1xf32>
    %24 = vector.broadcast %23 : vector<128x1xf32> to vector<128x16xf32>
    %25 = arith.subf %21, %24 : vector<128x16xf32>
    %26 = math.exp %25 : vector<128x16xf32>
    %cst_17 = arith.constant dense<0.000000e+00> : vector<128xf32>
    %27 = vector.multi_reduction <add>, %26, %cst_17 [1] : vector<128x16xf32> to vector<128xf32>
    %28 = vector.shape_cast %27 : vector<128xf32> to vector<128x1xf32>
    %29 = tpu.reciprocal %28 {approx = true} : vector<128x1xf32> -> vector<128x1xf32>
    %30 = vector.broadcast %29 : vector<128x1xf32> to vector<128x16xf32>
    %31 = arith.mulf %26, %30 : vector<128x16xf32>
    %cst_18 = arith.constant dense<0.000000e+00> : vector<128x32xf32>
    %32 = tpu.matmul %31, %15, %cst_18 {dimension_numbers = #tpu.dot_dimension_numbers<[1], [0], [0], [1], [0, 0, 1, 1], [], []>} : vector<128x16xf32>, vector<16x32xf32>, vector<128x32xf32> -> vector<128x32xf32>
    %33 = arith.mulf %32, %8 : vector<128x32xf32>
    %34 = vector.extract_strided_slice %33 {offsets = [0, 0], sizes = [16, 32], strides = [1, 1]} : vector<128x32xf32> to vector<16x32xf32>
    %35 = vector.extract_strided_slice %33 {offsets = [16, 0], sizes = [16, 32], strides = [1, 1]} : vector<128x32xf32> to vector<16x32xf32>
    %36 = arith.addf %34, %35 : vector<16x32xf32>
    %37 = vector.extract_strided_slice %33 {offsets = [32, 0], sizes = [16, 32], strides = [1, 1]} : vector<128x32xf32> to vector<16x32xf32>
    %38 = arith.addf %36, %37 : vector<16x32xf32>
    %39 = vector.extract_strided_slice %33 {offsets = [48, 0], sizes = [16, 32], strides = [1, 1]} : vector<128x32xf32> to vector<16x32xf32>
    %40 = arith.addf %38, %39 : vector<16x32xf32>
    %41 = vector.extract_strided_slice %33 {offsets = [64, 0], sizes = [16, 32], strides = [1, 1]} : vector<128x32xf32> to vector<16x32xf32>
    %42 = arith.addf %40, %41 : vector<16x32xf32>
    %43 = vector.extract_strided_slice %33 {offsets = [80, 0], sizes = [16, 32], strides = [1, 1]} : vector<128x32xf32> to vector<16x32xf32>
    %44 = arith.addf %42, %43 : vector<16x32xf32>
    %45 = vector.extract_strided_slice %33 {offsets = [96, 0], sizes = [16, 32], strides = [1, 1]} : vector<128x32xf32> to vector<16x32xf32>
    %46 = arith.addf %44, %45 : vector<16x32xf32>
    %47 = vector.extract_strided_slice %33 {offsets = [112, 0], sizes = [16, 32], strides = [1, 1]} : vector<128x32xf32> to vector<16x32xf32>
    %48 = arith.addf %46, %47 : vector<16x32xf32>
    %c0_19 = arith.constant 0 : index
    %c0_20 = arith.constant 0 : index
    %c0_21 = arith.constant 0 : index
    %49 = vector.load %arg8[%c0_19, %c0_20, %c0_21] : memref<2x32x32xf32, #tpu.memory_space<vmem>>, vector<1x32x32xf32>
    %50 = vector.shape_cast %49 : vector<1x32x32xf32> to vector<32x32xf32>
    %cst_22 = arith.constant dense<0.000000e+00> : vector<16x32xf32>
    %51 = tpu.matmul %48, %50, %cst_22 {dimension_numbers = #tpu.dot_dimension_numbers<[1], [0], [0], [1], [0, 0, 1, 1], [], []>} : vector<16x32xf32>, vector<32x32xf32>, vector<16x32xf32> -> vector<16x32xf32>
    %c0_23 = arith.constant 0 : index
    %c0_24 = arith.constant 0 : index
    %c0_25 = arith.constant 0 : index
    %52 = vector.load %arg9[%c0_23, %c0_24, %c0_25] : memref<2x1x32xf32, #tpu.memory_space<vmem>>, vector<1x1x32xf32>
    %53 = vector.shape_cast %52 : vector<1x1x32xf32> to vector<1x32xf32>
    %54 = vector.broadcast %53 : vector<1x32xf32> to vector<16x32xf32>
    %55 = arith.addf %51, %54 : vector<16x32xf32>
    %56 = arith.addf %55, %7 : vector<16x32xf32>
    %c0_26 = arith.constant 0 : index
    %c0_27 = arith.constant 0 : index
    %c0_28 = arith.constant 0 : index
    %57 = vector.load %arg10[%c0_26, %c0_27, %c0_28] : memref<2x1x32xf32, #tpu.memory_space<vmem>>, vector<1x1x32xf32>
    %58 = vector.shape_cast %57 : vector<1x1x32xf32> to vector<1x32xf32>
    %c0_29 = arith.constant 0 : index
    %c0_30 = arith.constant 0 : index
    %c0_31 = arith.constant 0 : index
    %59 = vector.load %arg11[%c0_29, %c0_30, %c0_31] : memref<2x1x32xf32, #tpu.memory_space<vmem>>, vector<1x1x32xf32>
    %60 = vector.shape_cast %59 : vector<1x1x32xf32> to vector<1x32xf32>
    %cst_32 = arith.constant dense<0.000000e+00> : vector<16xf32>
    %61 = vector.multi_reduction <add>, %56, %cst_32 [1] : vector<16x32xf32> to vector<16xf32>
    %62 = vector.shape_cast %61 : vector<16xf32> to vector<16x1xf32>
    %cst_33 = arith.constant 3.200000e+01 : f32
    %63 = vector.broadcast %cst_33 : f32 to vector<16x1xf32>
    %64 = arith.divf %62, %63 : vector<16x1xf32>
    %65 = vector.broadcast %64 : vector<16x1xf32> to vector<16x32xf32>
    %66 = arith.subf %56, %65 : vector<16x32xf32>
    %67 = vector.broadcast %64 : vector<16x1xf32> to vector<16x32xf32>
    %68 = arith.subf %56, %67 : vector<16x32xf32>
    %69 = arith.mulf %66, %68 : vector<16x32xf32>
    %cst_34 = arith.constant dense<0.000000e+00> : vector<16xf32>
    %70 = vector.multi_reduction <add>, %69, %cst_34 [1] : vector<16x32xf32> to vector<16xf32>
    %71 = vector.shape_cast %70 : vector<16xf32> to vector<16x1xf32>
    %cst_35 = arith.constant 3.200000e+01 : f32
    %72 = vector.broadcast %cst_35 : f32 to vector<16x1xf32>
    %73 = arith.divf %71, %72 : vector<16x1xf32>
    %74 = vector.broadcast %64 : vector<16x1xf32> to vector<16x32xf32>
    %75 = arith.subf %56, %74 : vector<16x32xf32>
    %cst_36 = arith.constant 9.99999974E-6 : f32
    %76 = vector.broadcast %cst_36 : f32 to vector<16x1xf32>
    %77 = arith.addf %73, %76 : vector<16x1xf32>
    %78 = math.rsqrt %77 : vector<16x1xf32>
    %79 = vector.broadcast %78 : vector<16x1xf32> to vector<16x32xf32>
    %80 = arith.mulf %75, %79 : vector<16x32xf32>
    %81 = vector.broadcast %58 : vector<1x32xf32> to vector<16x32xf32>
    %82 = arith.mulf %80, %81 : vector<16x32xf32>
    %83 = vector.broadcast %60 : vector<1x32xf32> to vector<16x32xf32>
    %84 = arith.addf %82, %83 : vector<16x32xf32>
    %c0_37 = arith.constant 0 : index
    %c0_38 = arith.constant 0 : index
    %c0_39 = arith.constant 0 : index
    %85 = vector.load %arg12[%c0_37, %c0_38, %c0_39] : memref<2x32x32xf32, #tpu.memory_space<vmem>>, vector<1x32x32xf32>
    %86 = vector.shape_cast %85 : vector<1x32x32xf32> to vector<32x32xf32>
    %cst_40 = arith.constant dense<0.000000e+00> : vector<16x32xf32>
    %87 = tpu.matmul %84, %86, %cst_40 {dimension_numbers = #tpu.dot_dimension_numbers<[1], [0], [0], [1], [0, 0, 1, 1], [], []>} : vector<16x32xf32>, vector<32x32xf32>, vector<16x32xf32> -> vector<16x32xf32>
    %c0_41 = arith.constant 0 : index
    %c0_42 = arith.constant 0 : index
    %c0_43 = arith.constant 0 : index
    %88 = vector.load %arg13[%c0_41, %c0_42, %c0_43] : memref<2x1x32xf32, #tpu.memory_space<vmem>>, vector<1x1x32xf32>
    %89 = vector.shape_cast %88 : vector<1x1x32xf32> to vector<1x32xf32>
    %90 = vector.broadcast %89 : vector<1x32xf32> to vector<16x32xf32>
    %91 = arith.addf %87, %90 : vector<16x32xf32>
    %cst_44 = arith.constant 0.000000e+00 : f32
    %92 = vector.broadcast %cst_44 : f32 to vector<16x32xf32>
    %93 = arith.subf %92, %91 : vector<16x32xf32>
    %94 = math.exp %93 : vector<16x32xf32>
    %cst_45 = arith.constant 1.000000e+00 : f32
    %95 = vector.broadcast %cst_45 : f32 to vector<16x32xf32>
    %96 = arith.addf %95, %94 : vector<16x32xf32>
    %97 = tpu.reciprocal %96 {approx = true} : vector<16x32xf32> -> vector<16x32xf32>
    %98 = arith.mulf %91, %97 : vector<16x32xf32>
    %c0_46 = arith.constant 0 : index
    %c0_47 = arith.constant 0 : index
    %c0_48 = arith.constant 0 : index
    %99 = vector.load %arg14[%c0_46, %c0_47, %c0_48] : memref<2x32x32xf32, #tpu.memory_space<vmem>>, vector<1x32x32xf32>
    %100 = vector.shape_cast %99 : vector<1x32x32xf32> to vector<32x32xf32>
    %cst_49 = arith.constant dense<0.000000e+00> : vector<16x32xf32>
    %101 = tpu.matmul %98, %100, %cst_49 {dimension_numbers = #tpu.dot_dimension_numbers<[1], [0], [0], [1], [0, 0, 1, 1], [], []>} : vector<16x32xf32>, vector<32x32xf32>, vector<16x32xf32> -> vector<16x32xf32>
    %c0_50 = arith.constant 0 : index
    %c0_51 = arith.constant 0 : index
    %c0_52 = arith.constant 0 : index
    %102 = vector.load %arg15[%c0_50, %c0_51, %c0_52] : memref<2x1x32xf32, #tpu.memory_space<vmem>>, vector<1x1x32xf32>
    %103 = vector.shape_cast %102 : vector<1x1x32xf32> to vector<1x32xf32>
    %104 = vector.broadcast %103 : vector<1x32xf32> to vector<16x32xf32>
    %105 = arith.addf %101, %104 : vector<16x32xf32>
    %106 = arith.addf %105, %84 : vector<16x32xf32>
    %c0_53 = arith.constant 0 : index
    %c0_54 = arith.constant 0 : index
    %c0_55 = arith.constant 0 : index
    %107 = vector.load %arg16[%c0_53, %c0_54, %c0_55] : memref<2x1x32xf32, #tpu.memory_space<vmem>>, vector<1x1x32xf32>
    %108 = vector.shape_cast %107 : vector<1x1x32xf32> to vector<1x32xf32>
    %c0_56 = arith.constant 0 : index
    %c0_57 = arith.constant 0 : index
    %c0_58 = arith.constant 0 : index
    %109 = vector.load %arg17[%c0_56, %c0_57, %c0_58] : memref<2x1x32xf32, #tpu.memory_space<vmem>>, vector<1x1x32xf32>
    %110 = vector.shape_cast %109 : vector<1x1x32xf32> to vector<1x32xf32>
    %cst_59 = arith.constant dense<0.000000e+00> : vector<16xf32>
    %111 = vector.multi_reduction <add>, %106, %cst_59 [1] : vector<16x32xf32> to vector<16xf32>
    %112 = vector.shape_cast %111 : vector<16xf32> to vector<16x1xf32>
    %cst_60 = arith.constant 3.200000e+01 : f32
    %113 = vector.broadcast %cst_60 : f32 to vector<16x1xf32>
    %114 = arith.divf %112, %113 : vector<16x1xf32>
    %115 = vector.broadcast %114 : vector<16x1xf32> to vector<16x32xf32>
    %116 = arith.subf %106, %115 : vector<16x32xf32>
    %117 = vector.broadcast %114 : vector<16x1xf32> to vector<16x32xf32>
    %118 = arith.subf %106, %117 : vector<16x32xf32>
    %119 = arith.mulf %116, %118 : vector<16x32xf32>
    %cst_61 = arith.constant dense<0.000000e+00> : vector<16xf32>
    %120 = vector.multi_reduction <add>, %119, %cst_61 [1] : vector<16x32xf32> to vector<16xf32>
    %121 = vector.shape_cast %120 : vector<16xf32> to vector<16x1xf32>
    %cst_62 = arith.constant 3.200000e+01 : f32
    %122 = vector.broadcast %cst_62 : f32 to vector<16x1xf32>
    %123 = arith.divf %121, %122 : vector<16x1xf32>
    %124 = vector.broadcast %114 : vector<16x1xf32> to vector<16x32xf32>
    %125 = arith.subf %106, %124 : vector<16x32xf32>
    %cst_63 = arith.constant 9.99999974E-6 : f32
    %126 = vector.broadcast %cst_63 : f32 to vector<16x1xf32>
    %127 = arith.addf %123, %126 : vector<16x1xf32>
    %128 = math.rsqrt %127 : vector<16x1xf32>
    %129 = vector.broadcast %128 : vector<16x1xf32> to vector<16x32xf32>
    %130 = arith.mulf %125, %129 : vector<16x32xf32>
    %131 = vector.broadcast %108 : vector<1x32xf32> to vector<16x32xf32>
    %132 = arith.mulf %130, %131 : vector<16x32xf32>
    %133 = vector.broadcast %110 : vector<1x32xf32> to vector<16x32xf32>
    %134 = arith.addf %132, %133 : vector<16x32xf32>
    %c1 = arith.constant 1 : index
    %c0_64 = arith.constant 0 : index
    %c0_65 = arith.constant 0 : index
    %135 = vector.load %arg7[%c1, %c0_64, %c0_65] : memref<2x32x96xf32, #tpu.memory_space<vmem>>, vector<1x32x96xf32>
    %136 = vector.shape_cast %135 : vector<1x32x96xf32> to vector<32x96xf32>
    %cst_66 = arith.constant dense<0.000000e+00> : vector<16x96xf32>
    %137 = tpu.matmul %134, %136, %cst_66 {dimension_numbers = #tpu.dot_dimension_numbers<[1], [0], [0], [1], [0, 0, 1, 1], [], []>} : vector<16x32xf32>, vector<32x96xf32>, vector<16x96xf32> -> vector<16x96xf32>
    %138 = vector.extract_strided_slice %137 {offsets = [0, 0], sizes = [16, 32], strides = [1, 1]} : vector<16x96xf32> to vector<16x32xf32>
    %139 = vector.extract_strided_slice %137 {offsets = [0, 32], sizes = [16, 32], strides = [1, 1]} : vector<16x96xf32> to vector<16x32xf32>
    %140 = vector.extract_strided_slice %137 {offsets = [0, 64], sizes = [16, 32], strides = [1, 1]} : vector<16x96xf32> to vector<16x32xf32>
    %141 = tpu.concatenate %138, %138, %138, %138, %138, %138, %138, %138 in 0 : vector<16x32xf32>, vector<16x32xf32>, vector<16x32xf32>, vector<16x32xf32>, vector<16x32xf32>, vector<16x32xf32>, vector<16x32xf32>, vector<16x32xf32> -> vector<128x32xf32>
    %142 = arith.mulf %141, %8 : vector<128x32xf32>
    %cst_67 = arith.constant dense<0.000000e+00> : vector<128x16xf32>
    %143 = tpu.matmul %142, %139, %cst_67 {dimension_numbers = #tpu.dot_dimension_numbers<[1], [1], [0], [0], [0, 0, 1, 0], [], []>} : vector<128x32xf32>, vector<16x32xf32>, vector<128x16xf32> -> vector<128x16xf32>
    %cst_68 = arith.constant 5.000000e-01 : f32
    %144 = vector.broadcast %cst_68 : f32 to vector<128x16xf32>
    %145 = arith.mulf %143, %144 : vector<128x16xf32>
    %146 = arith.addf %145, %9 : vector<128x16xf32>
    %cst_69 = arith.constant dense<0xFF800000> : vector<128xf32>
    %147 = vector.multi_reduction <maximumf>, %146, %cst_69 [1] : vector<128x16xf32> to vector<128xf32>
    %148 = vector.shape_cast %147 : vector<128xf32> to vector<128x1xf32>
    %149 = vector.broadcast %148 : vector<128x1xf32> to vector<128x16xf32>
    %150 = arith.subf %146, %149 : vector<128x16xf32>
    %151 = math.exp %150 : vector<128x16xf32>
    %cst_70 = arith.constant dense<0.000000e+00> : vector<128xf32>
    %152 = vector.multi_reduction <add>, %151, %cst_70 [1] : vector<128x16xf32> to vector<128xf32>
    %153 = vector.shape_cast %152 : vector<128xf32> to vector<128x1xf32>
    %154 = tpu.reciprocal %153 {approx = true} : vector<128x1xf32> -> vector<128x1xf32>
    %155 = vector.broadcast %154 : vector<128x1xf32> to vector<128x16xf32>
    %156 = arith.mulf %151, %155 : vector<128x16xf32>
    %cst_71 = arith.constant dense<0.000000e+00> : vector<128x32xf32>
    %157 = tpu.matmul %156, %140, %cst_71 {dimension_numbers = #tpu.dot_dimension_numbers<[1], [0], [0], [1], [0, 0, 1, 1], [], []>} : vector<128x16xf32>, vector<16x32xf32>, vector<128x32xf32> -> vector<128x32xf32>
    %158 = arith.mulf %157, %8 : vector<128x32xf32>
    %159 = vector.extract_strided_slice %158 {offsets = [0, 0], sizes = [16, 32], strides = [1, 1]} : vector<128x32xf32> to vector<16x32xf32>
    %160 = vector.extract_strided_slice %158 {offsets = [16, 0], sizes = [16, 32], strides = [1, 1]} : vector<128x32xf32> to vector<16x32xf32>
    %161 = arith.addf %159, %160 : vector<16x32xf32>
    %162 = vector.extract_strided_slice %158 {offsets = [32, 0], sizes = [16, 32], strides = [1, 1]} : vector<128x32xf32> to vector<16x32xf32>
    %163 = arith.addf %161, %162 : vector<16x32xf32>
    %164 = vector.extract_strided_slice %158 {offsets = [48, 0], sizes = [16, 32], strides = [1, 1]} : vector<128x32xf32> to vector<16x32xf32>
    %165 = arith.addf %163, %164 : vector<16x32xf32>
    %166 = vector.extract_strided_slice %158 {offsets = [64, 0], sizes = [16, 32], strides = [1, 1]} : vector<128x32xf32> to vector<16x32xf32>
    %167 = arith.addf %165, %166 : vector<16x32xf32>
    %168 = vector.extract_strided_slice %158 {offsets = [80, 0], sizes = [16, 32], strides = [1, 1]} : vector<128x32xf32> to vector<16x32xf32>
    %169 = arith.addf %167, %168 : vector<16x32xf32>
    %170 = vector.extract_strided_slice %158 {offsets = [96, 0], sizes = [16, 32], strides = [1, 1]} : vector<128x32xf32> to vector<16x32xf32>
    %171 = arith.addf %169, %170 : vector<16x32xf32>
    %172 = vector.extract_strided_slice %158 {offsets = [112, 0], sizes = [16, 32], strides = [1, 1]} : vector<128x32xf32> to vector<16x32xf32>
    %173 = arith.addf %171, %172 : vector<16x32xf32>
    %c1_72 = arith.constant 1 : index
    %c0_73 = arith.constant 0 : index
    %c0_74 = arith.constant 0 : index
    %174 = vector.load %arg8[%c1_72, %c0_73, %c0_74] : memref<2x32x32xf32, #tpu.memory_space<vmem>>, vector<1x32x32xf32>
    %175 = vector.shape_cast %174 : vector<1x32x32xf32> to vector<32x32xf32>
    %cst_75 = arith.constant dense<0.000000e+00> : vector<16x32xf32>
    %176 = tpu.matmul %173, %175, %cst_75 {dimension_numbers = #tpu.dot_dimension_numbers<[1], [0], [0], [1], [0, 0, 1, 1], [], []>} : vector<16x32xf32>, vector<32x32xf32>, vector<16x32xf32> -> vector<16x32xf32>
    %c1_76 = arith.constant 1 : index
    %c0_77 = arith.constant 0 : index
    %c0_78 = arith.constant 0 : index
    %177 = vector.load %arg9[%c1_76, %c0_77, %c0_78] : memref<2x1x32xf32, #tpu.memory_space<vmem>>, vector<1x1x32xf32>
    %178 = vector.shape_cast %177 : vector<1x1x32xf32> to vector<1x32xf32>
    %179 = vector.broadcast %178 : vector<1x32xf32> to vector<16x32xf32>
    %180 = arith.addf %176, %179 : vector<16x32xf32>
    %181 = arith.addf %180, %134 : vector<16x32xf32>
    %c1_79 = arith.constant 1 : index
    %c0_80 = arith.constant 0 : index
    %c0_81 = arith.constant 0 : index
    %182 = vector.load %arg10[%c1_79, %c0_80, %c0_81] : memref<2x1x32xf32, #tpu.memory_space<vmem>>, vector<1x1x32xf32>
    %183 = vector.shape_cast %182 : vector<1x1x32xf32> to vector<1x32xf32>
    %c1_82 = arith.constant 1 : index
    %c0_83 = arith.constant 0 : index
    %c0_84 = arith.constant 0 : index
    %184 = vector.load %arg11[%c1_82, %c0_83, %c0_84] : memref<2x1x32xf32, #tpu.memory_space<vmem>>, vector<1x1x32xf32>
    %185 = vector.shape_cast %184 : vector<1x1x32xf32> to vector<1x32xf32>
    %cst_85 = arith.constant dense<0.000000e+00> : vector<16xf32>
    %186 = vector.multi_reduction <add>, %181, %cst_85 [1] : vector<16x32xf32> to vector<16xf32>
    %187 = vector.shape_cast %186 : vector<16xf32> to vector<16x1xf32>
    %cst_86 = arith.constant 3.200000e+01 : f32
    %188 = vector.broadcast %cst_86 : f32 to vector<16x1xf32>
    %189 = arith.divf %187, %188 : vector<16x1xf32>
    %190 = vector.broadcast %189 : vector<16x1xf32> to vector<16x32xf32>
    %191 = arith.subf %181, %190 : vector<16x32xf32>
    %192 = vector.broadcast %189 : vector<16x1xf32> to vector<16x32xf32>
    %193 = arith.subf %181, %192 : vector<16x32xf32>
    %194 = arith.mulf %191, %193 : vector<16x32xf32>
    %cst_87 = arith.constant dense<0.000000e+00> : vector<16xf32>
    %195 = vector.multi_reduction <add>, %194, %cst_87 [1] : vector<16x32xf32> to vector<16xf32>
    %196 = vector.shape_cast %195 : vector<16xf32> to vector<16x1xf32>
    %cst_88 = arith.constant 3.200000e+01 : f32
    %197 = vector.broadcast %cst_88 : f32 to vector<16x1xf32>
    %198 = arith.divf %196, %197 : vector<16x1xf32>
    %199 = vector.broadcast %189 : vector<16x1xf32> to vector<16x32xf32>
    %200 = arith.subf %181, %199 : vector<16x32xf32>
    %cst_89 = arith.constant 9.99999974E-6 : f32
    %201 = vector.broadcast %cst_89 : f32 to vector<16x1xf32>
    %202 = arith.addf %198, %201 : vector<16x1xf32>
    %203 = math.rsqrt %202 : vector<16x1xf32>
    %204 = vector.broadcast %203 : vector<16x1xf32> to vector<16x32xf32>
    %205 = arith.mulf %200, %204 : vector<16x32xf32>
    %206 = vector.broadcast %183 : vector<1x32xf32> to vector<16x32xf32>
    %207 = arith.mulf %205, %206 : vector<16x32xf32>
    %208 = vector.broadcast %185 : vector<1x32xf32> to vector<16x32xf32>
    %209 = arith.addf %207, %208 : vector<16x32xf32>
    %c1_90 = arith.constant 1 : index
    %c0_91 = arith.constant 0 : index
    %c0_92 = arith.constant 0 : index
    %210 = vector.load %arg12[%c1_90, %c0_91, %c0_92] : memref<2x32x32xf32, #tpu.memory_space<vmem>>, vector<1x32x32xf32>
    %211 = vector.shape_cast %210 : vector<1x32x32xf32> to vector<32x32xf32>
    %cst_93 = arith.constant dense<0.000000e+00> : vector<16x32xf32>
    %212 = tpu.matmul %209, %211, %cst_93 {dimension_numbers = #tpu.dot_dimension_numbers<[1], [0], [0], [1], [0, 0, 1, 1], [], []>} : vector<16x32xf32>, vector<32x32xf32>, vector<16x32xf32> -> vector<16x32xf32>
    %c1_94 = arith.constant 1 : index
    %c0_95 = arith.constant 0 : index
    %c0_96 = arith.constant 0 : index
    %213 = vector.load %arg13[%c1_94, %c0_95, %c0_96] : memref<2x1x32xf32, #tpu.memory_space<vmem>>, vector<1x1x32xf32>
    %214 = vector.shape_cast %213 : vector<1x1x32xf32> to vector<1x32xf32>
    %215 = vector.broadcast %214 : vector<1x32xf32> to vector<16x32xf32>
    %216 = arith.addf %212, %215 : vector<16x32xf32>
    %cst_97 = arith.constant 0.000000e+00 : f32
    %217 = vector.broadcast %cst_97 : f32 to vector<16x32xf32>
    %218 = arith.subf %217, %216 : vector<16x32xf32>
    %219 = math.exp %218 : vector<16x32xf32>
    %cst_98 = arith.constant 1.000000e+00 : f32
    %220 = vector.broadcast %cst_98 : f32 to vector<16x32xf32>
    %221 = arith.addf %220, %219 : vector<16x32xf32>
    %222 = tpu.reciprocal %221 {approx = true} : vector<16x32xf32> -> vector<16x32xf32>
    %223 = arith.mulf %216, %222 : vector<16x32xf32>
    %c1_99 = arith.constant 1 : index
    %c0_100 = arith.constant 0 : index
    %c0_101 = arith.constant 0 : index
    %224 = vector.load %arg14[%c1_99, %c0_100, %c0_101] : memref<2x32x32xf32, #tpu.memory_space<vmem>>, vector<1x32x32xf32>
    %225 = vector.shape_cast %224 : vector<1x32x32xf32> to vector<32x32xf32>
    %cst_102 = arith.constant dense<0.000000e+00> : vector<16x32xf32>
    %226 = tpu.matmul %223, %225, %cst_102 {dimension_numbers = #tpu.dot_dimension_numbers<[1], [0], [0], [1], [0, 0, 1, 1], [], []>} : vector<16x32xf32>, vector<32x32xf32>, vector<16x32xf32> -> vector<16x32xf32>
    %c1_103 = arith.constant 1 : index
    %c0_104 = arith.constant 0 : index
    %c0_105 = arith.constant 0 : index
    %227 = vector.load %arg15[%c1_103, %c0_104, %c0_105] : memref<2x1x32xf32, #tpu.memory_space<vmem>>, vector<1x1x32xf32>
    %228 = vector.shape_cast %227 : vector<1x1x32xf32> to vector<1x32xf32>
    %229 = vector.broadcast %228 : vector<1x32xf32> to vector<16x32xf32>
    %230 = arith.addf %226, %229 : vector<16x32xf32>
    %231 = arith.addf %230, %209 : vector<16x32xf32>
    %c1_106 = arith.constant 1 : index
    %c0_107 = arith.constant 0 : index
    %c0_108 = arith.constant 0 : index
    %232 = vector.load %arg16[%c1_106, %c0_107, %c0_108] : memref<2x1x32xf32, #tpu.memory_space<vmem>>, vector<1x1x32xf32>
    %233 = vector.shape_cast %232 : vector<1x1x32xf32> to vector<1x32xf32>
    %c1_109 = arith.constant 1 : index
    %c0_110 = arith.constant 0 : index
    %c0_111 = arith.constant 0 : index
    %234 = vector.load %arg17[%c1_109, %c0_110, %c0_111] : memref<2x1x32xf32, #tpu.memory_space<vmem>>, vector<1x1x32xf32>
    %235 = vector.shape_cast %234 : vector<1x1x32xf32> to vector<1x32xf32>
    %cst_112 = arith.constant dense<0.000000e+00> : vector<16xf32>
    %236 = vector.multi_reduction <add>, %231, %cst_112 [1] : vector<16x32xf32> to vector<16xf32>
    %237 = vector.shape_cast %236 : vector<16xf32> to vector<16x1xf32>
    %cst_113 = arith.constant 3.200000e+01 : f32
    %238 = vector.broadcast %cst_113 : f32 to vector<16x1xf32>
    %239 = arith.divf %237, %238 : vector<16x1xf32>
    %240 = vector.broadcast %239 : vector<16x1xf32> to vector<16x32xf32>
    %241 = arith.subf %231, %240 : vector<16x32xf32>
    %242 = vector.broadcast %239 : vector<16x1xf32> to vector<16x32xf32>
    %243 = arith.subf %231, %242 : vector<16x32xf32>
    %244 = arith.mulf %241, %243 : vector<16x32xf32>
    %cst_114 = arith.constant dense<0.000000e+00> : vector<16xf32>
    %245 = vector.multi_reduction <add>, %244, %cst_114 [1] : vector<16x32xf32> to vector<16xf32>
    %246 = vector.shape_cast %245 : vector<16xf32> to vector<16x1xf32>
    %cst_115 = arith.constant 3.200000e+01 : f32
    %247 = vector.broadcast %cst_115 : f32 to vector<16x1xf32>
    %248 = arith.divf %246, %247 : vector<16x1xf32>
    %249 = vector.broadcast %239 : vector<16x1xf32> to vector<16x32xf32>
    %250 = arith.subf %231, %249 : vector<16x32xf32>
    %cst_116 = arith.constant 9.99999974E-6 : f32
    %251 = vector.broadcast %cst_116 : f32 to vector<16x1xf32>
    %252 = arith.addf %248, %251 : vector<16x1xf32>
    %253 = math.rsqrt %252 : vector<16x1xf32>
    %254 = vector.broadcast %253 : vector<16x1xf32> to vector<16x32xf32>
    %255 = arith.mulf %250, %254 : vector<16x32xf32>
    %256 = vector.broadcast %233 : vector<1x32xf32> to vector<16x32xf32>
    %257 = arith.mulf %255, %256 : vector<16x32xf32>
    %258 = vector.broadcast %235 : vector<1x32xf32> to vector<16x32xf32>
    %259 = arith.addf %257, %258 : vector<16x32xf32>
    %c0_117 = arith.constant 0 : index
    %c0_118 = arith.constant 0 : index
    %260 = vector.load %arg18[%c0_117, %c0_118] : memref<32x16xf32, #tpu.memory_space<vmem>>, vector<32x16xf32>
    %cst_119 = arith.constant dense<0.000000e+00> : vector<16x16xf32>
    %261 = tpu.matmul %259, %260, %cst_119 {dimension_numbers = #tpu.dot_dimension_numbers<[1], [0], [0], [1], [0, 0, 1, 1], [], []>} : vector<16x32xf32>, vector<32x16xf32>, vector<16x16xf32> -> vector<16x16xf32>
    %c0_120 = arith.constant 0 : index
    %c0_121 = arith.constant 0 : index
    %262 = vector.load %arg19[%c0_120, %c0_121] : memref<1x16xf32, #tpu.memory_space<vmem>>, vector<1x16xf32>
    %263 = vector.broadcast %262 : vector<1x16xf32> to vector<16x16xf32>
    %264 = arith.addf %261, %263 : vector<16x16xf32>
    %265 = arith.addf %264, %0 : vector<16x16xf32>
    %c0_122 = arith.constant 0 : index
    %c0_123 = arith.constant 0 : index
    %266 = vector.load %arg20[%c0_122, %c0_123] : memref<16x16xf32, #tpu.memory_space<vmem>>, vector<16x16xf32>
    tpu.vector_store %arg20[%c0_122, %c0_123], %265 {strides = array<i32>} : memref<16x16xf32, #tpu.memory_space<vmem>>, vector<16x16xf32>,
    return
  }
  func.func @transform_0(%arg0: i32) -> (i32, i32) {
    %c0_i32 = arith.constant 0 : i32
    %c0_i32_0 = arith.constant 0 : i32
    %c0_i32_1 = arith.constant 0 : i32
    return %c0_i32, %c0_i32_0 : i32, i32
  }
  func.func @transform_1(%arg0: i32) -> (i32, i32) {
    %c0_i32 = arith.constant 0 : i32
    %c0_i32_0 = arith.constant 0 : i32
    %c0_i32_1 = arith.constant 0 : i32
    return %c0_i32, %c0_i32_0 : i32, i32
  }
  func.func @transform_2(%arg0: i32) -> (i32, i32) {
    %c0_i32 = arith.constant 0 : i32
    %c0_i32_0 = arith.constant 0 : i32
    %c0_i32_1 = arith.constant 0 : i32
    return %c0_i32, %c0_i32_0 : i32, i32
  }
  func.func @transform_3(%arg0: i32) -> (i32, i32) {
    %c0_i32 = arith.constant 0 : i32
    %c0_i32_0 = arith.constant 0 : i32
    %c0_i32_1 = arith.constant 0 : i32
    return %c0_i32, %c0_i32_0 : i32, i32
  }
  func.func @transform_4(%arg0: i32) -> (i32, i32) {
    %c0_i32 = arith.constant 0 : i32
    %c0_i32_0 = arith.constant 0 : i32
    %c0_i32_1 = arith.constant 0 : i32
    return %c0_i32, %c0_i32_0 : i32, i32
  }
  func.func @transform_5(%arg0: i32) -> (i32, i32) {
    %c0_i32 = arith.constant 0 : i32
    %c0_i32_0 = arith.constant 0 : i32
    %c0_i32_1 = arith.constant 0 : i32
    return %c0_i32, %c0_i32_0 : i32, i32
  }
  func.func @transform_6(%arg0: i32) -> (i32, i32, i32) {
    %c0_i32 = arith.constant 0 : i32
    %c0_i32_0 = arith.constant 0 : i32
    %c0_i32_1 = arith.constant 0 : i32
    %c0_i32_2 = arith.constant 0 : i32
    return %c0_i32, %c0_i32_0, %c0_i32_1 : i32, i32, i32
  }
  func.func @transform_7(%arg0: i32) -> (i32, i32, i32) {
    %c0_i32 = arith.constant 0 : i32
    %c0_i32_0 = arith.constant 0 : i32
    %c0_i32_1 = arith.constant 0 : i32
    %c0_i32_2 = arith.constant 0 : i32
    return %c0_i32, %c0_i32_0, %c0_i32_1 : i32, i32, i32
  }
  func.func @transform_8(%arg0: i32) -> (i32, i32, i32) {
    %c0_i32 = arith.constant 0 : i32
    %c0_i32_0 = arith.constant 0 : i32
    %c0_i32_1 = arith.constant 0 : i32
    %c0_i32_2 = arith.constant 0 : i32
    return %c0_i32, %c0_i32_0, %c0_i32_1 : i32, i32, i32
  }
  func.func @transform_9(%arg0: i32) -> (i32, i32, i32) {
    %c0_i32 = arith.constant 0 : i32
    %c0_i32_0 = arith.constant 0 : i32
    %c0_i32_1 = arith.constant 0 : i32
    %c0_i32_2 = arith.constant 0 : i32
    return %c0_i32, %c0_i32_0, %c0_i32_1 : i32, i32, i32
  }
  func.func @transform_10(%arg0: i32) -> (i32, i32, i32) {
    %c0_i32 = arith.constant 0 : i32
    %c0_i32_0 = arith.constant 0 : i32
    %c0_i32_1 = arith.constant 0 : i32
    %c0_i32_2 = arith.constant 0 : i32
    return %c0_i32, %c0_i32_0, %c0_i32_1 : i32, i32, i32
  }
  func.func @transform_11(%arg0: i32) -> (i32, i32, i32) {
    %c0_i32 = arith.constant 0 : i32
    %c0_i32_0 = arith.constant 0 : i32
    %c0_i32_1 = arith.constant 0 : i32
    %c0_i32_2 = arith.constant 0 : i32
    return %c0_i32, %c0_i32_0, %c0_i32_1 : i32, i32, i32
  }
  func.func @transform_12(%arg0: i32) -> (i32, i32, i32) {
    %c0_i32 = arith.constant 0 : i32
    %c0_i32_0 = arith.constant 0 : i32
    %c0_i32_1 = arith.constant 0 : i32
    %c0_i32_2 = arith.constant 0 : i32
    return %c0_i32, %c0_i32_0, %c0_i32_1 : i32, i32, i32
  }
  func.func @transform_13(%arg0: i32) -> (i32, i32, i32) {
    %c0_i32 = arith.constant 0 : i32
    %c0_i32_0 = arith.constant 0 : i32
    %c0_i32_1 = arith.constant 0 : i32
    %c0_i32_2 = arith.constant 0 : i32
    return %c0_i32, %c0_i32_0, %c0_i32_1 : i32, i32, i32
  }
  func.func @transform_14(%arg0: i32) -> (i32, i32, i32) {
    %c0_i32 = arith.constant 0 : i32
    %c0_i32_0 = arith.constant 0 : i32
    %c0_i32_1 = arith.constant 0 : i32
    %c0_i32_2 = arith.constant 0 : i32
    return %c0_i32, %c0_i32_0, %c0_i32_1 : i32, i32, i32
  }
  func.func @transform_15(%arg0: i32) -> (i32, i32, i32) {
    %c0_i32 = arith.constant 0 : i32
    %c0_i32_0 = arith.constant 0 : i32
    %c0_i32_1 = arith.constant 0 : i32
    %c0_i32_2 = arith.constant 0 : i32
    return %c0_i32, %c0_i32_0, %c0_i32_1 : i32, i32, i32
  }
  func.func @transform_16(%arg0: i32) -> (i32, i32, i32) {
    %c0_i32 = arith.constant 0 : i32
    %c0_i32_0 = arith.constant 0 : i32
    %c0_i32_1 = arith.constant 0 : i32
    %c0_i32_2 = arith.constant 0 : i32
    return %c0_i32, %c0_i32_0, %c0_i32_1 : i32, i32, i32
  }
  func.func @transform_17(%arg0: i32) -> (i32, i32) {
    %c0_i32 = arith.constant 0 : i32
    %c0_i32_0 = arith.constant 0 : i32
    %c0_i32_1 = arith.constant 0 : i32
    return %c0_i32, %c0_i32_0 : i32, i32
  }
  func.func @transform_18(%arg0: i32) -> (i32, i32) {
    %c0_i32 = arith.constant 0 : i32
    %c0_i32_0 = arith.constant 0 : i32
    %c0_i32_1 = arith.constant 0 : i32
    return %c0_i32, %c0_i32_0 : i32, i32
  }
  func.func @transform_19(%arg0: i32) -> (i32, i32) {
    %c0_i32 = arith.constant 0 : i32
    %c0_i32_0 = arith.constant 0 : i32
    %c0_i32_1 = arith.constant 0 : i32
    return %c0_i32, %c0_i32_0 : i32, i32
  }
}

</mosaic_0001>

<bundles_post_ra>
// kernel: tpu_custom_call.1
= control target key start
LH: loop header
LB: loop body
LE: loop exit
PB: predicated region body
PF: predicated region fallthrough
CT: control target
= control target key end

     0   :  { %s4400_s0 = inlined_call_operand.vmem [shape: f32[16,16], index: 0, kind: input, shape index: {}]   ;;  %s4401_s1 = inlined_call_operand.vmem [shape: f32[16,32], index: 1, kind: input, shape index: {}]   ;;  %s4402_s2 = inlined_call_operand.vmem [shape: f32[16,32], index: 2, kind: input, shape index: {}]   ;;  %s4403_s3 = inlined_call_operand.hbm [shape: f32[1,32], index: 3, kind: input, shape index: {}]   ;;  %s4404_s4 = inlined_call_operand.vmem [shape: f32[128,32], index: 4, kind: input, shape index: {}]   ;;  %s4405_s5 = inlined_call_operand.vmem [shape: f32[128,16], index: 5, kind: input, shape index: {}]   ;;  %s4406_s6 = inlined_call_operand.vmem [shape: f32[2,32,96], index: 6, kind: input, shape index: {}]   ;;  %s4407_s7 = inlined_call_operand.vmem [shape: f32[2,32,32], index: 7, kind: input, shape index: {}]   ;;  %s4408_s8 = inlined_call_operand.vmem [shape: f32[2,1,32], index: 8, kind: input, shape index: {}]   ;;  %s4409_s9 = inlined_call_operand.vmem [shape: f32[2,1,32], index: 9, kind: input, shape index: {}]   ;;  %s4410_s10 = inlined_call_operand.vmem [shape: f32[2,1,32], index: 10, kind: input, shape index: {}]   ;;  %s4411_s11 = inlined_call_operand.vmem [shape: f32[2,32,32], index: 11, kind: input, shape index: {}]   ;;  %s4412_s12 = inlined_call_operand.vmem [shape: f32[2,1,32], index: 12, kind: input, shape index: {}]   ;;  %s4413_s13 = inlined_call_operand.vmem [shape: f32[2,32,32], index: 13, kind: input, shape index: {}]   ;;  %s4414_s14 = inlined_call_operand.vmem [shape: f32[2,1,32], index: 14, kind: input, shape index: {}]   ;;  %s4415_s15 = inlined_call_operand.vmem [shape: f32[2,1,32], index: 15, kind: input, shape index: {}]   ;;  %s4416_s16 = inlined_call_operand.vmem [shape: f32[2,1,32], index: 16, kind: input, shape index: {}]   ;;  %s4417_s17 = inlined_call_operand.vmem [shape: f32[32,16], index: 17, kind: input, shape index: {}]   ;;  %s4418_s18 = inlined_call_operand.vmem [shape: f32[1,16], index: 18, kind: input, shape index: {}]   ;;  %s4419_s19 = inlined_call_operand.hbm [shape: f32[16,16], index: 19, kind: output, shape index: {}]  }
   0x1   :  { %4422 = sst [smem:[#allocation8_spill]] %s4400_s0 }
   0x2   :  { %4423 = sst [smem:[#allocation9_spill]] %s4402_s2 }
   0x3   :  { %4424 = sst [smem:[#allocation10_spill]] %s4403_s3 }
   0x4   :  { %24 = vsyncpa [#allocation3], 0 }
   0x5   :  { %25 = vsyncpa [#allocation4], 0  ;;  %s3289_s0 = smov [#allocation2]  }
   0x6   :  { %s38_s30 = sshll.u32 %s3289_s0, 4  ;;  %s39_s30 = int_to_ptr.vmem [resolvable:$true] %s38_s30 }
   0x7   :  { %s3253_s20 = scalar_lea.vmem %s39_s30, 16  ;;  %s3257_s21 = scalar_lea.vmem %s39_s30, 32 }
   0x8   :  { %p3254_p0 = scmp.ne.s32.totalorder %s39_s30, %s3253_s20  ;;  %p3258_p1 = scmp.lt.s32.totalorder %s39_s30, %s39_s30 }
   0x9   :  { %p3259_p2 = scmp.lt.s32.totalorder %s3257_s21, %s3253_s20 }
   0xb   :  { %p3260_p3 = por %p3259_p2, %p3258_p1 }
   0xd   :  { %p3261_p4 = pnand %p3260_p3, %p3254_p0 }
   0xf   :  { %3264 = shalt.err (!%p3261_p4)
}
  0x10   :  { %s4425_s2 = sld [smem:[#allocation10_spill]] }
  0x16   :  { %41 = dma.hbm_to_vmem [thread:$0]  %s4425_s2, 16, %s39_s30, [#allocation3]  }
  0x17   :  { %3285 = dma.done.wait [#allocation3], 16  }
  0x18   :  { %3286 = vsyncadd [#allocation3], 4294967280  ;;  %vm86_vm0 = vcmask 130048   ;;  %s4426_s25 = sld [smem:[#allocation9_spill]]  ;;  %v205_v4 = vld [vmem:[%s4406_s6 + $0x18] sm:$0xff]  ;;  %v204_v5 = vld [vmem:[%s4406_s6 + $0x10] sm:$0xff] }
  0x19   :  { %s4427_s29 = sld [smem:[#allocation8_spill]]  ;;  %2834 = vmatprep.subr.mxu1 %v205_v4  ;;  %v203_v6 = vld [vmem:[%s4406_s6 + $0x8] sm:$0xff]  ;;  %v202_v7 = vld [vmem:[%s4406_s6] sm:$0xff]  ;;  %vm206_vm1 = vcmask 261120   ;;  %s3290_s27 = smov 96   ;;  %v3463_v22 = vld [vmem:[%s4404_s4 + $0x10] sm:$0xff] }
  0x1a   :  { %2835 = vmatpush3.msra.mxu1 %v205_v4  ;;  %v2570_v8 = vld [vmem:[#allocation2] ss:$0 sm:$0xff]  ;;  %v3457_v21 = vld [vmem:[%s4404_s4 + $0x8] sm:$0xff]  ;;  %v3473_v25 = vld [vmem:[%s4404_s4 + $0x18] sm:$0xff] }
  0x1b   :  { %2836 = vmatprep.subr.mxu1 %v204_v5  ;;  %v3441_v16 = vld [vmem:[%s4404_s4] sm:$0xff]  ;;  %v3489_v29 = vld [vmem:[%s4404_s4 + $0x28] sm:$0xff]  ;;  %v3495_v30 = vld [vmem:[%s4404_s4 + $0x30] sm:$0xff] }
  0x1c   :  { %2837 = vmatpush3.msra.mxu1 %v204_v5  ;;  %v3479_v26 = vld [vmem:[%s4404_s4 + $0x20] sm:$0xff]  ;;  %v3505_v33 = vld [vmem:[%s4404_s4 + $0x38] sm:$0xff]  ;;  %v3521_v37 = vld [vmem:[%s4404_s4 + $0x48] sm:$0xff] }
  0x1d   :  { %2838 = vmatprep.subr.mxu1 %v203_v6  ;;  %v3511_v34 = vld [vmem:[%s4404_s4 + $0x40] sm:$0xff]  ;;  %v3527_v38 = vld [vmem:[%s4404_s4 + $0x50] sm:$0xff]  ;;  %v3537_v41 = vld [vmem:[%s4404_s4 + $0x58] sm:$0xff] }
  0x1e   :  { %v78_v0 = vld [vmem:[%s4426_s25 + $0x8] sm:$0xff]  ;;  %v77_v1 = vld [vmem:[%s4426_s25] sm:$0xff]  ;;  %2839 = vmatpush3.msra.mxu1 %v203_v6  ;;  %v3559_v46 = vld [vmem:[%s4404_s4 + $0x70] sm:$0xff]  ;;  %s3291_s25 = smov 64  }
  0x1f   :  { %v75_v2 = vld [vmem:[%s4427_s29] sm:$0xff]  ;;  %2827 = vmatprep.subr.mxu0 %v78_v0  ;;  %v76_v3 = vld [vmem:[%s4427_s29 + $0x8] sm:$0xff]  ;;  %2840 = vmatprep.subr.mxu1 %v202_v7  ;;  %v3569_v49 = vld [vmem:[%s4404_s4 + $0x78] sm:$0xff] }
  0x20   :  { %2831 = vmatprep.mubr.msk.f32.mxu0 %vm86_vm0, %v75_v2  ;;  %2828 = vmatpush3.msra.mxu0 %v78_v0  ;;  %v3543_v42 = vld [vmem:[%s4404_s4 + $0x60] sm:$0xff]  ;;  %v3553_v45 = vld [vmem:[%s4404_s4 + $0x68] sm:$0xff]  ;;  %v188_v63 = vld [vmem:[%s4405_s5 + $0x10] sm:$0xff] }
  0x21   :  { %2829 = vmatprep.subr.mxu0 %v77_v1  ;;  %2841 = vmatpush3.msra.mxu1 %v202_v7  ;;  %v187_v52 = vld [vmem:[%s4405_s5 + $0x8] sm:$0xff]  ;;  %v186_v55 = vld [vmem:[%s4405_s5] sm:$0xff]  ;;  %v189_v0 = vld [vmem:[%s4405_s5 + $0x18] sm:$0xff] }
  0x22   :  { %2830 = vmatpush3.msra.mxu0 %v77_v1 }
  0x23   :  { %2832 = vmatmul.mubr.msk.f32.vlgmr.msra.gmra.mxu0 %vm86_vm0, %v76_v3 }
  0xe3   :  { %v2833_v9 = vpop.f32.mrf.mxu0 }
  0xe4   :  { %v3424_v10 = vadd.f32 %v2833_v9, %v2570_v8 }
  0xe5   :  { %v159_v11 = vpop.f32.mrf.mxu0 }
  0xe6   :  { %v3426_v12 = vadd.f32 %v2570_v8, %v159_v11  ;;  %v169_v14 = vmax.f32 %v3424_v10, 0.0  ;;  %v191_v8 = vld [vmem:[%s4405_s5 + $0x28] sm:$0xff] }
  0xe8   :  { %v168_v13 = vmax.f32 %v3426_v12, 0.0 }
  0xea   :  { %2842 = vmatprep.mubr.msk.f32.mxu1 %vm206_vm1, %v168_v13 }
  0xeb   :  { %2843 = vmatmul.mubr.msk.f32.vlgmr.msra.gmra.mxu1 %vm206_vm1, %v169_v14 }
 0x1ab   :  { %v3436_v15 = vpop.f32.mrf.mxu1 }
 0x1ac   :  { %308 = vrot.lane.b32.xlu0 %v3436_v15, %s3290_s27  ;;  %v289_v23 = vmul.f32 %v3436_v15, %v3457_v21  ;;  %v291_v27 = vmul.f32 %v3436_v15, %v3473_v25  ;;  %v293_v31 = vmul.f32 %v3436_v15, %v3489_v29  ;;  %v295_v35 = vmul.f32 %v3436_v15, %v3505_v33 }
 0x1ad   :  { %v3445_v17 = vpop.f32.mrf.mxu1  ;;  %v297_v39 = vmul.f32 %v3436_v15, %v3521_v37  ;;  %v299_v43 = vmul.f32 %v3436_v15, %v3537_v41  ;;  %v301_v47 = vmul.f32 %v3436_v15, %v3553_v45  ;;  %v303_v50 = vmul.f32 %v3436_v15, %v3569_v49 }
 0x1ae   :  { %v288_v18 = vmul.f32 %v3445_v17, %v3441_v16  ;;  %v290_v24 = vmul.f32 %v3445_v17, %v3463_v22  ;;  %v292_v28 = vmul.f32 %v3445_v17, %v3479_v26  ;;  %v294_v32 = vmul.f32 %v3445_v17, %v3495_v30 }
 0x1af   :  { %v296_v36 = vmul.f32 %v3445_v17, %v3511_v34  ;;  %v298_v40 = vmul.f32 %v3445_v17, %v3527_v38  ;;  %v300_v44 = vmul.f32 %v3445_v17, %v3543_v42  ;;  %v302_v48 = vmul.f32 %v3445_v17, %v3559_v46 }
 0x1b0   :  { %306 = vrot.lane.b32.xlu0 %v3445_v17, %s3290_s27  ;;  %2849 = vmatprep.mubr.msk.f32.mxu0 %vm206_vm1, %v288_v18 }
 0x21e   :  { %v309_v19 = vpop.permute.xlu0 %308 }
 0x21f   :  { %2845 = vmatprep.subr.msk.mxu0 %vm206_vm1, %v309_v19 }
 0x220   :  { %2846 = vmatpush3.xpose.msk.msra.mxu0 %vm206_vm1, %v309_v19 }
 0x222   :  { %v307_v20 = vpop.permute.xlu0 %306 }
 0x223   :  { %2847 = vmatprep.subr.msk.mxu0 %vm206_vm1, %v307_v20 }
 0x224   :  { %2848 = vmatpush3.xpose.msk.msra.mxu0 %vm206_vm1, %v307_v20 }
 0x227   :  { %2850 = vmatmul.mubr.msk.f32.vlgmr.msra.gmra.mxu0 %vm206_vm1, %v289_v23 }
 0x228   :  { %2852 = vmatprep.mubr.msk.f32.mxu0 %vm206_vm1, %v290_v24  ;;  %v190_v24 = vld [vmem:[%s4405_s5 + $0x20] sm:$0xff] }
 0x22b   :  { %2853 = vmatmul.mubr.msk.f32.gmra.mxu0 %vm206_vm1, %v291_v27 }
 0x22c   :  { %2855 = vmatprep.mubr.msk.f32.mxu0 %vm206_vm1, %v292_v28 }
 0x22f   :  { %2856 = vmatmul.mubr.msk.f32.gmra.mxu0 %vm206_vm1, %v293_v31 }
 0x230   :  { %2858 = vmatprep.mubr.msk.f32.mxu0 %vm206_vm1, %v294_v32 }
 0x233   :  { %2859 = vmatmul.mubr.msk.f32.gmra.mxu0 %vm206_vm1, %v295_v35 }
 0x234   :  { %2861 = vmatprep.mubr.msk.f32.mxu0 %vm206_vm1, %v296_v36  ;;  %v193_v36 = vld [vmem:[%s4405_s5 + $0x38] sm:$0xff] }
 0x237   :  { %2862 = vmatmul.mubr.msk.f32.gmra.mxu0 %vm206_vm1, %v297_v39 }
 0x238   :  { %2864 = vmatprep.mubr.msk.f32.mxu0 %vm206_vm1, %v298_v40  ;;  %v197_v40 = vld [vmem:[%s4405_s5 + $0x58] sm:$0xff] }
 0x23b   :  { %2865 = vmatmul.mubr.msk.f32.gmra.mxu0 %vm206_vm1, %v299_v43 }
 0x23c   :  { %2867 = vmatprep.mubr.msk.f32.mxu0 %vm206_vm1, %v300_v44 }
 0x23f   :  { %2868 = vmatmul.mubr.msk.f32.gmra.mxu0 %vm206_vm1, %v301_v47 }
 0x240   :  { %2870 = vmatprep.mubr.msk.f32.mxu0 %vm206_vm1, %v302_v48 }
 0x243   :  { %2871 = vmatmul.mubr.msk.f32.gmra.mxu0 %vm206_vm1, %v303_v50 }
 0x2e7   :  { %v2851_v51 = vpop.f32.mrf.mxu0 }
 0x2e8   :  { %v508_v53 = vmul.f32 0.5, %v2851_v51  ;;  %v192_v51 = vld [vmem:[%s4405_s5 + $0x30] sm:$0xff] }
 0x2e9   :  { %v428_v54 = vpop.f32.mrf.mxu0 }
 0x2ea   :  { %v507_v56 = vmul.f32 0.5, %v428_v54  ;;  %v3582_v57 = vadd.f32 %v508_v53, %v187_v52 }
 0x2eb   :  { %v2854_v58 = vpop.f32.mrf.mxu0 }
 0x2ec   :  { %v510_v59 = vmul.f32 0.5, %v2854_v58  ;;  %v542_v60 = vsel %vm86_vm0, %v3582_v57, -inf  ;;  %v3586_v61 = vadd.f32 %v507_v56, %v186_v55  ;;  %v199_v55 = vld [vmem:[%s4405_s5 + $0x68] sm:$0xff] }
 0x2ed   :  { %543 = vmax.xlane.f32.xlu1 %v542_v60  ;;  %v438_v62 = vpop.f32.mrf.mxu0 }
 0x2ee   :  { %v509_v1 = vmul.f32 0.5, %v438_v62  ;;  %v539_v4 = vsel %vm86_vm0, %v3586_v61, -inf  ;;  %v3598_v6 = vadd.f32 %v510_v59, %v189_v0 }
 0x2ef   :  { %v2857_v2 = vpop.f32.mrf.mxu0 }
 0x2f0   :  { %v512_v3 = vmul.f32 0.5, %v2857_v2  ;;  %v3596_v5 = vadd.f32 %v509_v1, %v188_v63  ;;  %v548_v19 = vsel %vm86_vm0, %v3598_v6, -inf  ;;  %v195_v63 = vld [vmem:[%s4405_s5 + $0x48] sm:$0xff] }
 0x2f1   :  { %540 = vmax.xlane.f32.xlu1 %v539_v4  ;;  %v448_v7 = vpop.f32.mrf.mxu0 }
 0x2f2   :  { %v545_v9 = vsel %vm86_vm0, %v3596_v5, -inf  ;;  %v511_v18 = vmul.f32 0.5, %v448_v7  ;;  %v3607_v20 = vadd.f32 %v512_v3, %v191_v8  ;;  %v201_v3 = vld [vmem:[%s4405_s5 + $0x78] sm:$0xff] }
 0x2f3   :  { %546 = vmax.xlane.f32.xlu0 %v545_v9  ;;  %v2860_v11 = vpop.f32.mrf.mxu0 }
 0x2f4   :  { %v514_v28 = vmul.f32 0.5, %v2860_v11  ;;  %v554_v31 = vsel %vm86_vm0, %v3607_v20, -inf  ;;  %v3614_v32 = vadd.f32 %v511_v18, %v190_v24  ;;  %v194_v11 = vld [vmem:[%s4405_s5 + $0x40] sm:$0xff] }
 0x2f5   :  { %549 = vmax.xlane.f32.xlu1 %v548_v19  ;;  %v458_v23 = vpop.f32.mrf.mxu0 }
 0x2f6   :  { %v513_v43 = vmul.f32 0.5, %v458_v23  ;;  %v551_v47 = vsel %vm86_vm0, %v3614_v32, -inf  ;;  %v3624_v48 = vadd.f32 %v514_v28, %v193_v36  ;;  %v196_v28 = vld [vmem:[%s4405_s5 + $0x50] sm:$0xff] }
 0x2f7   :  { %v2863_v27 = vpop.f32.mrf.mxu0 }
 0x2f8   :  { %v516_v53 = vmul.f32 0.5, %v2863_v27  ;;  %v560_v58 = vsel %vm86_vm0, %v3624_v48, -inf  ;;  %v3638_v60 = vadd.f32 %v513_v43, %v192_v51 }
 0x2f9   :  { %555 = vmax.xlane.f32.xlu1 %v554_v31  ;;  %v468_v35 = vpop.f32.mrf.mxu0 }
 0x2fa   :  { %v515_v1 = vmul.f32 0.5, %v468_v35  ;;  %v557_v7 = vsel %vm86_vm0, %v3638_v60, -inf  ;;  %v3652_v9 = vadd.f32 %v516_v53, %v195_v63 }
 0x2fb   :  { %v2866_v39 = vpop.f32.mrf.mxu0 }
 0x2fc   :  { %v518_v44 = vmul.f32 0.5, %v2866_v39  ;;  %v566_v23 = vsel %vm86_vm0, %v3652_v9, -inf  ;;  %v3663_v27 = vadd.f32 %v515_v1, %v194_v11 }
 0x2fd   :  { %552 = vmax.xlane.f32.xlu1 %v551_v47  ;;  %v478_v50 = vpop.f32.mrf.mxu0 }
 0x2fe   :  { %v3629_v52 = vadd.f32 %v518_v44, %v197_v40  ;;  %v517_v19 = vmul.f32 0.5, %v478_v50  ;;  %v563_v35 = vsel %vm86_vm0, %v3663_v27, -inf  ;;  %v198_v40 = vld [vmem:[%s4405_s5 + $0x60] sm:$0xff]  ;;  %v200_v50 = vld [vmem:[%s4405_s5 + $0x70] sm:$0xff] }
 0x2ff   :  { %v2869_v54 = vpop.f32.mrf.mxu0 }
 0x300   :  { %v520_v56 = vmul.f32 0.5, %v2869_v54  ;;  %v572_v59 = vsel %vm86_vm0, %v3629_v52, -inf  ;;  %v3670_v36 = vadd.f32 %v517_v19, %v196_v28 }
 0x301   :  { %561 = vmax.xlane.f32.xlu1 %v560_v58  ;;  %573 = vmax.xlane.f32.xlu0 %v572_v59  ;;  %v488_v62 = vpop.f32.mrf.mxu0 }
 0x302   :  { %v3643_v0 = vadd.f32 %v520_v56, %v199_v55  ;;  %v519_v31 = vmul.f32 0.5, %v488_v62  ;;  %v569_v44 = vsel %vm86_vm0, %v3670_v36, -inf }
 0x303   :  { %v2872_v2 = vpop.f32.mrf.mxu0 }
 0x304   :  { %v522_v4 = vmul.f32 0.5, %v2872_v2  ;;  %v578_v8 = vsel %vm86_vm0, %v3643_v0, -inf  ;;  %v3677_v47 = vadd.f32 %v519_v31, %v198_v40 }
 0x305   :  { %558 = vmax.xlane.f32.xlu1 %v557_v7  ;;  %579 = vmax.xlane.f32.xlu0 %v578_v8  ;;  %v498_v39 = vpop.f32.mrf.mxu0 }
 0x306   :  { %v3657_v18 = vadd.f32 %v522_v4, %v201_v3  ;;  %v521_v43 = vmul.f32 0.5, %v498_v39  ;;  %v575_v51 = vsel %vm86_vm0, %v3677_v47, -inf }
 0x308   :  { %v584_v24 = vsel %vm86_vm0, %v3657_v18, -inf  ;;  %v3684_v53 = vadd.f32 %v521_v43, %v200_v50 }
 0x309   :  { %567 = vmax.xlane.f32.xlu1 %v566_v23  ;;  %585 = vmax.xlane.f32.xlu0 %v584_v24 }
 0x30a   :  { %v581_v54 = vsel %vm86_vm0, %v3684_v53, -inf }
 0x30d   :  { %564 = vmax.xlane.f32.xlu1 %v563_v35 }
 0x311   :  { %570 = vmax.xlane.f32.xlu1 %v569_v44 }
 0x315   :  { %576 = vmax.xlane.f32.xlu1 %v575_v51 }
 0x319   :  { %582 = vmax.xlane.f32.xlu1 %v581_v54 }
 0x31f   :  { %715 = vrot.lane.b32.xlu0 %v3445_v17, %s3291_s25 }
 0x32a   :  { %717 = vrot.lane.b32.xlu1 %v3436_v15, %s3291_s25 }
 0x376   :  { %v544_v55 = vpop.xlane.xlu1 %543 }
 0x377   :  { %v588_v56 = vsub.f32 %v3582_v57, %v544_v55 }
 0x379   :  { %v605_v58 = vmul.f32 1.442695, %v588_v56 }
 0x37a   :  { %v541_v59 = vpop.xlane.xlu1 %540 }
 0x37b   :  { %3051 = vpow2.f32 %v605_v58  ;;  %v587_v62 = vsub.f32 %v3586_v61, %v541_v59 }
 0x37c   :  { %v547_v63 = vpop.xlane.xlu0 %546 }
 0x37d   :  { %v603_v1 = vmul.f32 1.442695, %v587_v62  ;;  %v589_v2 = vsub.f32 %v3596_v5, %v547_v63 }
 0x37e   :  { %v550_v3 = vpop.xlane.xlu1 %549 }
 0x37f   :  { %3053 = vpow2.f32 %v603_v1  ;;  %v607_v4 = vmul.f32 1.442695, %v589_v2  ;;  %v590_v17 = vsub.f32 %v3598_v6, %v550_v3 }
 0x381   :  { %3055 = vpow2.f32 %v607_v4  ;;  %v609_v7 = vmul.f32 1.442695, %v590_v17 }
 0x382   :  { %v556_v15 = vpop.xlane.xlu1 %555 }
 0x383   :  { %3057 = vpow2.f32 %v609_v7  ;;  %v592_v57 = vsub.f32 %v3607_v20, %v556_v15 }
 0x385   :  { %v613_v8 = vmul.f32 1.442695, %v592_v57 }
 0x386   :  { %v553_v11 = vpop.xlane.xlu1 %552 }
 0x387   :  { %3059 = vpow2.f32 %v613_v8  ;;  %v591_v61 = vsub.f32 %v3614_v32, %v553_v11 }
 0x388   :  { %v3698_v19 = vpop.eup %3051 }
 0x389   :  { %v611_v23 = vmul.f32 1.442695, %v591_v61  ;;  %v638_v5 = vsel %vm86_vm0, %v3698_v19, 0.0 }
 0x38a   :  { %v562_v24 = vpop.xlane.xlu1 %561  ;;  %v574_v28 = vpop.xlane.xlu0 %573  ;;  %639 = vadd.xlane.f32.xlu0 %v638_v5 }
 0x38b   :  { %3061 = vpow2.f32 %v611_v23  ;;  %v594_v6 = vsub.f32 %v3624_v48, %v562_v24  ;;  %v598_v44 = vsub.f32 %v3629_v52, %v574_v28 }
 0x38c   :  { %v3703_v31 = vpop.eup %3053 }
 0x38d   :  { %v617_v20 = vmul.f32 1.442695, %v594_v6  ;;  %v635_v35 = vsel %vm86_vm0, %v3703_v31, 0.0 }
 0x38e   :  { %v3707_v39 = vpop.eup %3055  ;;  %v559_v32 = vpop.xlane.xlu1 %558  ;;  %636 = vadd.xlane.f32.xlu1 %v635_v35 }
 0x38f   :  { %3063 = vpow2.f32 %v617_v20  ;;  %v593_v40 = vsub.f32 %v3638_v60, %v559_v32  ;;  %v580_v50 = vpop.xlane.xlu0 %579  ;;  %v641_v54 = vsel %vm86_vm0, %v3707_v39, 0.0  ;;  %v625_v60 = vmul.f32 1.442695, %v598_v44 }
 0x390   :  { %v3710_v43 = vpop.eup %3057  ;;  %v600_v59 = vsub.f32 %v3643_v0, %v580_v50 }
 0x391   :  { %v615_v51 = vmul.f32 1.442695, %v593_v40  ;;  %v644_v48 = vsel %vm86_vm0, %v3710_v43, 0.0 }
 0x392   :  { %v568_v55 = vpop.xlane.xlu1 %567  ;;  %645 = vadd.xlane.f32.xlu0 %v644_v48  ;;  %642 = vadd.xlane.f32.xlu1 %v641_v54  ;;  %v629_v4 = vmul.f32 1.442695, %v600_v59 }
 0x393   :  { %3065 = vpow2.f32 %v615_v51  ;;  %v596_v56 = vsub.f32 %v3652_v9, %v568_v55  ;;  %v586_v63 = vpop.xlane.xlu0 %585 }
 0x394   :  { %v3718_v58 = vpop.eup %3059  ;;  %v602_v9 = vsub.f32 %v3657_v18, %v586_v63 }
 0x395   :  { %v621_v52 = vmul.f32 1.442695, %v596_v56  ;;  %v650_v62 = vsel %vm86_vm0, %v3718_v58, 0.0 }
 0x396   :  { %v565_v1 = vpop.xlane.xlu1 %564  ;;  %651 = vadd.xlane.f32.xlu0 %v650_v62  ;;  %v633_v8 = vmul.f32 1.442695, %v602_v9 }
 0x397   :  { %3067 = vpow2.f32 %v621_v52  ;;  %v595_v2 = vsub.f32 %v3663_v27, %v565_v1  ;;  %v716_v44 = vpop.permute.xlu0 %715 }
 0x398   :  { %v3724_v3 = vpop.eup %3061  ;;  %3069 = vpow2.f32 %v625_v60 }
 0x399   :  { %v619_v17 = vmul.f32 1.442695, %v595_v2  ;;  %v647_v0 = vsel %vm86_vm0, %v3724_v3, 0.0 }
 0x39a   :  { %v571_v7 = vpop.xlane.xlu1 %570  ;;  %648 = vadd.xlane.f32.xlu1 %v647_v0 }
 0x39b   :  { %3071 = vpow2.f32 %v619_v17  ;;  %v597_v15 = vsub.f32 %v3670_v36, %v571_v7 }
 0x39c   :  { %v3730_v57 = vpop.eup %3063  ;;  %3073 = vpow2.f32 %v629_v4 }
 0x39d   :  { %v623_v27 = vmul.f32 1.442695, %v597_v15  ;;  %v656_v11 = vsel %vm86_vm0, %v3730_v57, 0.0 }
 0x39e   :  { %v577_v61 = vpop.xlane.xlu1 %576  ;;  %657 = vadd.xlane.f32.xlu0 %v656_v11 }
 0x39f   :  { %3075 = vpow2.f32 %v623_v27  ;;  %v599_v18 = vsub.f32 %v3677_v47, %v577_v61 }
 0x3a0   :  { %v3735_v23 = vpop.eup %3065  ;;  %3077 = vpow2.f32 %v633_v8 }
 0x3a1   :  { %v627_v5 = vmul.f32 1.442695, %v599_v18  ;;  %v653_v36 = vsel %vm86_vm0, %v3735_v23, 0.0 }
 0x3a2   :  { %654 = vadd.xlane.f32.xlu1 %v653_v36  ;;  %v583_v24 = vpop.xlane.xlu1 %582 }
 0x3a3   :  { %3079 = vpow2.f32 %v627_v5  ;;  %v601_v28 = vsub.f32 %v3684_v53, %v583_v24 }
 0x3a4   :  { %v3740_v6 = vpop.eup %3067 }
 0x3a5   :  { %v3742_v20 = vpop.eup %3069  ;;  %v631_v35 = vmul.f32 1.442695, %v601_v28  ;;  %v662_v47 = vsel %vm86_vm0, %v3740_v6, 0.0 }
 0x3a6   :  { %663 = vadd.xlane.f32.xlu0 %v662_v47  ;;  %v718_v32 = vpop.permute.xlu1 %717  ;;  %v668_v53 = vsel %vm86_vm0, %v3742_v20, 0.0 }
 0x3a7   :  { %3081 = vpow2.f32 %v631_v35  ;;  %2873 = vmatprep.subr.mxu1 %v718_v32 }
 0x3a8   :  { %v3746_v40 = vpop.eup %3071  ;;  %2874 = vmatpush3.msra.mxu1 %v718_v32 }
 0x3a9   :  { %2875 = vmatprep.subr.mxu1 %v716_v44  ;;  %v659_v50 = vsel %vm86_vm0, %v3746_v40, 0.0  ;;  %v3752_v51 = vpop.eup %3073 }
 0x3aa   :  { %669 = vadd.xlane.f32.xlu0 %v668_v53  ;;  %660 = vadd.xlane.f32.xlu1 %v659_v50  ;;  %v674_v54 = vsel %vm86_vm0, %v3752_v51, 0.0 }
 0x3ab   :  { %2876 = vmatpush3.msra.mxu1 %v716_v44 }
 0x3ac   :  { %v3754_v48 = vpop.eup %3075 }
 0x3ad   :  { %v665_v55 = vsel %vm86_vm0, %v3754_v48, 0.0  ;;  %v3760_v56 = vpop.eup %3077 }
 0x3ae   :  { %675 = vadd.xlane.f32.xlu0 %v674_v54  ;;  %666 = vadd.xlane.f32.xlu1 %v665_v55  ;;  %v680_v59 = vsel %vm86_vm0, %v3760_v56, 0.0 }
 0x3b0   :  { %v3762_v60 = vpop.eup %3079 }
 0x3b1   :  { %v671_v52 = vsel %vm86_vm0, %v3762_v60, 0.0 }
 0x3b2   :  { %681 = vadd.xlane.f32.xlu0 %v680_v59  ;;  %672 = vadd.xlane.f32.xlu1 %v671_v52 }
 0x3b4   :  { %v3768_v62 = vpop.eup %3081 }
 0x3b5   :  { %v677_v63 = vsel %vm86_vm0, %v3768_v62, 0.0 }
 0x3b6   :  { %678 = vadd.xlane.f32.xlu1 %v677_v63 }
 0x413   :  { %v640_v1 = vpop.xlane.xlu0 %639 }
 0x414   :  { %3083 = vrcp.f32 %v640_v1 }
 0x417   :  { %v637_v2 = vpop.xlane.xlu1 %636 }
 0x418   :  { %3085 = vrcp.f32 %v637_v2 }
 0x41b   :  { %v646_v4 = vpop.xlane.xlu0 %645  ;;  %v643_v9 = vpop.xlane.xlu1 %642 }
 0x41c   :  { %3087 = vrcp.f32 %v646_v4 }
 0x41d   :  { %3089 = vrcp.f32 %v643_v9 }
 0x41f   :  { %v652_v17 = vpop.xlane.xlu0 %651 }
 0x420   :  { %3091 = vrcp.f32 %v652_v17 }
 0x421   :  { %v3084_v7 = vpop.eup %3083 }
 0x422   :  { %v700_v27 = vmul.f32 %v3084_v7, %v3698_v19 }
 0x423   :  { %v649_v0 = vpop.xlane.xlu1 %648 }
 0x424   :  { %3093 = vrcp.f32 %v649_v0 }
 0x425   :  { %v3086_v15 = vpop.eup %3085 }
 0x426   :  { %v699_v8 = vmul.f32 %v3086_v15, %v3703_v31 }
 0x427   :  { %v658_v11 = vpop.xlane.xlu0 %657 }
 0x428   :  { %2877 = vmatprep.mubr.msk.f32.mxu1 %vm86_vm0, %v699_v8  ;;  %3095 = vrcp.f32 %v658_v11 }
 0x429   :  { %v3088_v61 = vpop.eup %3087  ;;  %2878 = vmatmul.mubr.msk.f32.vlgmr.msra.gmra.mxu1 %vm86_vm0, %v700_v27 }
 0x42a   :  { %v3090_v18 = vpop.eup %3089  ;;  %v702_v5 = vmul.f32 %v3088_v61, %v3710_v43 }
 0x42b   :  { %v655_v36 = vpop.xlane.xlu1 %654  ;;  %v701_v24 = vmul.f32 %v3090_v18, %v3707_v39 }
 0x42c   :  { %3097 = vrcp.f32 %v655_v36 }
 0x42d   :  { %2880 = vmatprep.mubr.msk.f32.mxu1 %vm86_vm0, %v701_v24  ;;  %v3092_v19 = vpop.eup %3091 }
 0x42e   :  { %2881 = vmatmul.mubr.msk.f32.gmra.mxu1 %vm86_vm0, %v702_v5  ;;  %v704_v44 = vmul.f32 %v3092_v19, %v3718_v58 }
 0x42f   :  { %v664_v31 = vpop.xlane.xlu0 %663 }
 0x430   :  { %3099 = vrcp.f32 %v664_v31 }
 0x431   :  { %v3094_v28 = vpop.eup %3093 }
 0x432   :  { %v703_v35 = vmul.f32 %v3094_v28, %v3724_v3 }
 0x433   :  { %v670_v47 = vpop.xlane.xlu0 %669  ;;  %v661_v32 = vpop.xlane.xlu1 %660 }
 0x434   :  { %2883 = vmatprep.mubr.msk.f32.mxu1 %vm86_vm0, %v703_v35  ;;  %3101 = vrcp.f32 %v661_v32 }
 0x435   :  { %2884 = vmatmul.mubr.msk.f32.gmra.mxu1 %vm86_vm0, %v704_v44  ;;  %v3096_v53 = vpop.eup %3095  ;;  %3103 = vrcp.f32 %v670_v47 }
 0x436   :  { %v706_v3 = vmul.f32 %v3096_v53, %v3730_v57 }
 0x437   :  { %v676_v39 = vpop.xlane.xlu0 %675  ;;  %v667_v43 = vpop.xlane.xlu1 %666 }
 0x438   :  { %3105 = vrcp.f32 %v667_v43 }
 0x439   :  { %v3098_v50 = vpop.eup %3097  ;;  %3107 = vrcp.f32 %v676_v39 }
 0x43a   :  { %v705_v54 = vmul.f32 %v3098_v50, %v3735_v23 }
 0x43b   :  { %v673_v55 = vpop.xlane.xlu1 %672  ;;  %v682_v59 = vpop.xlane.xlu0 %681 }
 0x43c   :  { %2886 = vmatprep.mubr.msk.f32.mxu1 %vm86_vm0, %v705_v54  ;;  %3109 = vrcp.f32 %v673_v55 }
 0x43d   :  { %2887 = vmatmul.mubr.msk.f32.gmra.mxu1 %vm86_vm0, %v706_v3  ;;  %3111 = vrcp.f32 %v682_v59  ;;  %v3100_v52 = vpop.eup %3099 }
 0x43e   :  { %v708_v2 = vmul.f32 %v3100_v52, %v3740_v6 }
 0x43f   :  { %v679_v58 = vpop.xlane.xlu1 %678 }
 0x440   :  { %3113 = vrcp.f32 %v679_v58 }
 0x441   :  { %v3102_v63 = vpop.eup %3101 }
 0x442   :  { %v707_v1 = vmul.f32 %v3102_v63, %v3746_v40  ;;  %v3104_v23 = vpop.eup %3103 }
 0x443   :  { %v710_v9 = vmul.f32 %v3104_v23, %v3742_v20 }
 0x444   :  { %2889 = vmatprep.mubr.msk.f32.mxu1 %vm86_vm0, %v707_v1 }
 0x445   :  { %v3106_v57 = vpop.eup %3105  ;;  %2890 = vmatmul.mubr.msk.f32.gmra.mxu1 %vm86_vm0, %v708_v2 }
 0x446   :  { %v709_v4 = vmul.f32 %v3106_v57, %v3754_v48  ;;  %v3108_v17 = vpop.eup %3107 }
 0x447   :  { %v712_v6 = vmul.f32 %v3108_v17, %v3752_v51  ;;  %v946_v51 = vld [vmem:[%s4407_s7 + $0x10] sm:$0xff] }
 0x448   :  { %2892 = vmatprep.mubr.msk.f32.mxu1 %vm86_vm0, %v709_v4 }
 0x449   :  { %v3110_v0 = vpop.eup %3109  ;;  %2893 = vmatmul.mubr.msk.f32.gmra.mxu1 %vm86_vm0, %v710_v9 }
 0x44a   :  { %v711_v40 = vmul.f32 %v3110_v0, %v3762_v60  ;;  %v3112_v7 = vpop.eup %3111  ;;  %v947_v60 = vld [vmem:[%s4407_s7 + $0x18] sm:$0xff] }
 0x44b   :  { %v714_v20 = vmul.f32 %v3112_v7, %v3760_v56  ;;  %2901 = vmatprep.subr.mxu0 %v947_v60  ;;  %v944_v56 = vld [vmem:[%s4407_s7] sm:$0xff] }
 0x44c   :  { %2895 = vmatprep.mubr.msk.f32.mxu1 %vm86_vm0, %v711_v40  ;;  %2902 = vmatpush3.msra.mxu0 %v947_v60 }
 0x44d   :  { %v3114_v15 = vpop.eup %3113  ;;  %2896 = vmatmul.mubr.msk.f32.gmra.mxu1 %vm86_vm0, %v712_v6  ;;  %2903 = vmatprep.subr.mxu0 %v946_v51 }
 0x44e   :  { %v713_v48 = vmul.f32 %v3114_v15, %v3768_v62  ;;  %2904 = vmatpush3.msra.mxu0 %v946_v51  ;;  %v945_v62 = vld [vmem:[%s4407_s7 + $0x8] sm:$0xff] }
 0x44f   :  { %2905 = vmatprep.subr.mxu0 %v945_v62 }
 0x450   :  { %2898 = vmatprep.mubr.msk.f32.mxu1 %vm86_vm0, %v713_v48  ;;  %2906 = vmatpush3.msra.mxu0 %v945_v62 }
 0x451   :  { %2899 = vmatmul.mubr.msk.f32.gmra.mxu1 %vm86_vm0, %v714_v20  ;;  %2907 = vmatprep.subr.mxu0 %v944_v56  ;;  %v1086_v20 = vld [vmem:[%s4411_s11 + $0x18] sm:$0xff] }
 0x452   :  { %2908 = vmatpush3.msra.mxu0 %v944_v56  ;;  %2912 = vmatprep.subr.mxu1 %v1086_v20 }
 0x453   :  { %2913 = vmatpush3.msra.mxu1 %v1086_v20 }
 0x4e9   :  { %v2879_v8 = vpop.f32.mrf.mxu1 }
 0x4ea   :  { %v915_v44 = vmul.f32 %v2879_v8, %v3457_v21 }
 0x4eb   :  { %v835_v27 = vpop.f32.mrf.mxu1 }
 0x4ec   :  { %v914_v47 = vmul.f32 %v835_v27, %v3441_v16 }
 0x4ee   :  { %v2882_v11 = vpop.f32.mrf.mxu1 }
 0x4ef   :  { %v917_v28 = vmul.f32 %v2882_v11, %v3473_v25  ;;  %v1085_v11 = vld [vmem:[%s4411_s11 + $0x10] sm:$0xff] }
 0x4f0   :  { %v845_v61 = vpop.f32.mrf.mxu1  ;;  %2914 = vmatprep.subr.mxu1 %v1085_v11 }
 0x4f1   :  { %v916_v19 = vmul.f32 %v845_v61, %v3463_v22  ;;  %v931_v54 = vadd.f32 %v917_v28, %v915_v44  ;;  %v1084_v61 = vld [vmem:[%s4411_s11 + $0x8] sm:$0xff]  ;;  %2915 = vmatpush3.msra.mxu1 %v1085_v11 }
 0x4f2   :  { %2916 = vmatprep.subr.mxu1 %v1084_v61 }
 0x4f3   :  { %v930_v53 = vadd.f32 %v916_v19, %v914_v47  ;;  %2917 = vmatpush3.msra.mxu1 %v1084_v61  ;;  %v2612_v47 = vld [vmem:[%s4409_s9] ss:$0 sm:$0xff] }
 0x4f5   :  { %v2885_v18 = vpop.f32.mrf.mxu1 }
 0x4f6   :  { %v919_v39 = vmul.f32 %v2885_v18, %v3489_v29  ;;  %v1083_v18 = vld [vmem:[%s4411_s11] sm:$0xff] }
 0x4f7   :  { %v855_v5 = vpop.f32.mrf.mxu1  ;;  %2918 = vmatprep.subr.mxu1 %v1083_v18 }
 0x4f8   :  { %v918_v32 = vmul.f32 %v855_v5, %v3479_v26  ;;  %v933_v59 = vadd.f32 %v931_v54, %v919_v39  ;;  %2919 = vmatpush3.msra.mxu1 %v1083_v18 }
 0x4fa   :  { %v932_v22 = vadd.f32 %v930_v53, %v918_v32  ;;  %v2613_v53 = vld [vmem:[%s4410_s10] ss:$0 sm:$0xff] }
 0x4fd   :  { %v2888_v36 = vpop.f32.mrf.mxu1 }
 0x4fe   :  { %v921_v55 = vmul.f32 %v2888_v36, %v3505_v33 }
 0x4ff   :  { %v865_v24 = vpop.f32.mrf.mxu1 }
 0x500   :  { %v920_v50 = vmul.f32 %v865_v24, %v3495_v30  ;;  %v935_v52 = vadd.f32 %v933_v59, %v921_v55  ;;  %v1187_v59 = vld [vmem:[%s4413_s13] sm:$0xff] }
 0x502   :  { %v934_v26 = vadd.f32 %v932_v22, %v920_v50  ;;  %v1189_v22 = vld [vmem:[%s4413_s13 + $0x10] sm:$0xff] }
 0x505   :  { %v2891_v31 = vpop.f32.mrf.mxu1 }
 0x506   :  { %v923_v16 = vmul.f32 %v2891_v31, %v3521_v37 }
 0x507   :  { %v875_v35 = vpop.f32.mrf.mxu1 }
 0x508   :  { %v922_v25 = vmul.f32 %v875_v35, %v3511_v34  ;;  %v937_v2 = vadd.f32 %v935_v52, %v923_v16  ;;  %v2614_v16 = vld [vmem:[%s4412_s12] ss:$0 sm:$0xff] }
 0x509   :  { %v2894_v43 = vpop.f32.mrf.mxu1 }
 0x50a   :  { %v925_v29 = vmul.f32 %v2894_v43, %v3537_v41  ;;  %v936_v1 = vadd.f32 %v934_v26, %v922_v25  ;;  %v2609_v41 = vld [vmem:[%s4408_s8] ss:$0 sm:$0xff]  ;;  %v1188_v25 = vld [vmem:[%s4413_s13 + $0x8] sm:$0xff] }
 0x50b   :  { %v885_v3 = vpop.f32.mrf.mxu1 }
 0x50c   :  { %v924_v21 = vmul.f32 %v885_v3, %v3527_v38  ;;  %v939_v34 = vadd.f32 %v937_v2, %v925_v29  ;;  %v1190_v3 = vld [vmem:[%s4413_s13 + $0x18] sm:$0xff] }
 0x50d   :  { %v2897_v58 = vpop.f32.mrf.mxu1  ;;  %2923 = vmatprep.subr.mxu0 %v1190_v3 }
 0x50e   :  { %v927_v33 = vmul.f32 %v2897_v58, %v3553_v45  ;;  %v938_v57 = vadd.f32 %v936_v1, %v924_v21 }
 0x50f   :  { %v895_v63 = vpop.f32.mrf.mxu1 }
 0x510   :  { %v926_v30 = vmul.f32 %v895_v63, %v3543_v42  ;;  %v941_v38 = vadd.f32 %v939_v34, %v927_v33 }
 0x511   :  { %v2900_v23 = vpop.f32.mrf.mxu1 }
 0x512   :  { %v929_v4 = vmul.f32 %v2900_v23, %v3569_v49  ;;  %v940_v9 = vadd.f32 %v938_v57, %v926_v30 }
 0x513   :  { %v905_v37 = vpop.f32.mrf.mxu1 }
 0x514   :  { %v928_v17 = vmul.f32 %v905_v37, %v3559_v46  ;;  %v943_v40 = vadd.f32 %v941_v38, %v929_v4 }
 0x516   :  { %v942_v0 = vadd.f32 %v940_v9, %v928_v17  ;;  %v2617_v17 = vld [vmem:[%s4414_s14] ss:$0 sm:$0xff] }
 0x518   :  { %2909 = vmatprep.mubr.msk.f32.mxu0 %vm206_vm1, %v942_v0 }
 0x519   :  { %2910 = vmatmul.mubr.msk.f32.vlgmr.msra.gmra.mxu0 %vm206_vm1, %v943_v40 }
 0x51a   :  { %2924 = vmatpush3.msra.mxu0 %v1190_v3 }
 0x51b   :  { %2925 = vmatprep.subr.mxu0 %v1189_v22 }
 0x51c   :  { %2926 = vmatpush3.msra.mxu0 %v1189_v22 }
 0x51d   :  { %2927 = vmatprep.subr.mxu0 %v1188_v25 }
 0x51e   :  { %2928 = vmatpush3.msra.mxu0 %v1188_v25  ;;  %v3938_v25 = vld [vmem:[%s4404_s4 + $0x8] sm:$0xff] }
 0x51f   :  { %2929 = vmatprep.subr.mxu0 %v1187_v59 }
 0x520   :  { %2930 = vmatpush3.msra.mxu0 %v1187_v59 }
 0x5d9   :  { %v2911_v42 = vpop.f32.mrf.mxu0 }
 0x5da   :  { %v1033_v45 = vadd.f32 %v2911_v42, %v2609_v41 }
 0x5db   :  { %v1027_v7 = vpop.f32.mrf.mxu0 }
 0x5dc   :  { %v1028_v6 = vadd.f32 %v2609_v41, %v1027_v7  ;;  %v1037_v49 = vadd.f32 %v1033_v45, %v169_v14 }
 0x5de   :  { %v1043_v46 = vsel %vm206_vm1, %v1037_v49, 0.0  ;;  %v1036_v15 = vadd.f32 %v1028_v6, %v168_v13 }
 0x5df   :  { %1044 = vadd.xlane.f32.xlu0 %v1043_v46 }
 0x5e0   :  { %v1040_v48 = vsel %vm206_vm1, %v1036_v15, 0.0 }
 0x5e1   :  { %1041 = vadd.xlane.f32.xlu1 %v1040_v48 }
 0x668   :  { %v1045_v60 = vpop.xlane.xlu0 %1044 }
 0x669   :  { %v1048_v51 = vmul.f32 0.03125, %v1045_v60 }
 0x66a   :  { %v1042_v62 = vpop.xlane.xlu1 %1041 }
 0x66b   :  { %v1050_v10 = vsub.f32 %v1037_v49, %v1048_v51  ;;  %v1047_v14 = vmul.f32 0.03125, %v1042_v62 }
 0x66d   :  { %v1049_v56 = vsub.f32 %v1036_v15, %v1047_v14  ;;  %v1052_v8 = vmul.f32 %v1050_v10, %v1050_v10 }
 0x66f   :  { %v1056_v12 = vsel %vm206_vm1, %v1052_v8, 0.0  ;;  %v1051_v13 = vmul.f32 %v1049_v56, %v1049_v56  ;;  %v2624_v8 = vld [vmem:[%s4406_s6 + $0x30] sm:$0xff] }
 0x670   :  { %1057 = vadd.xlane.f32.xlu0 %v1056_v12  ;;  %v2623_v12 = vld [vmem:[%s4406_s6 + $0x28] sm:$0xff] }
 0x671   :  { %v1053_v27 = vsel %vm206_vm1, %v1051_v13, 0.0  ;;  %v2622_v13 = vld [vmem:[%s4406_s6 + $0x20] sm:$0xff] }
 0x672   :  { %1054 = vadd.xlane.f32.xlu1 %v1053_v27 }
 0x6f9   :  { %v1058_v5 = vpop.xlane.xlu0 %1057 }
 0x6fa   :  { %v1060_v36 = vmul.f32 0.03125, %v1058_v5 }
 0x6fb   :  { %v1055_v24 = vpop.xlane.xlu1 %1054 }
 0x6fc   :  { %v1062_v31 = vadd.f32 1e-05, %v1060_v36  ;;  %v1059_v19 = vmul.f32 0.03125, %v1055_v24 }
 0x6fe   :  { %3115 = vrsqrt.f32 %v1062_v31  ;;  %v1061_v28 = vadd.f32 1e-05, %v1059_v19  ;;  %v2620_v31 = vld [vmem:[%s4415_s15] ss:$0 sm:$0xff] }
 0x700   :  { %3117 = vrsqrt.f32 %v1061_v28 }
 0x70b   :  { %v3116_v35 = vpop.eup %3115 }
 0x70c   :  { %v1066_v32 = vmul.f32 %v3116_v35, %v1050_v10 }
 0x70d   :  { %v3118_v44 = vpop.eup %3117 }
 0x70e   :  { %v1065_v39 = vmul.f32 %v3118_v44, %v1049_v56  ;;  %v1074_v43 = vmul.f32 %v2612_v47, %v1066_v32  ;;  %v2625_v56 = vld [vmem:[%s4406_s6 + $0x38] sm:$0xff]  ;;  %v2621_v32 = vld [vmem:[%s4416_s16] ss:$0 sm:$0xff] }
 0x70f   :  { %2934 = vmatprep.subr.mxu1 %v2625_v56 }
 0x710   :  { %v1073_v50 = vmul.f32 %v2612_v47, %v1065_v39  ;;  %v1082_v55 = vadd.f32 %v2613_v53, %v1074_v43 }
 0x712   :  { %v1081_v54 = vadd.f32 %v2613_v53, %v1073_v50 }
 0x714   :  { %2920 = vmatprep.mubr.msk.f32.mxu1 %vm206_vm1, %v1081_v54 }
 0x715   :  { %2921 = vmatmul.mubr.msk.f32.vlgmr.msra.gmra.mxu1 %vm206_vm1, %v1082_v55 }
 0x716   :  { %2935 = vmatpush3.msra.mxu1 %v2625_v56 }
 0x717   :  { %2936 = vmatprep.subr.mxu1 %v2624_v8 }
 0x718   :  { %2937 = vmatpush3.msra.mxu1 %v2624_v8  ;;  %v3228_v8 = vld [vmem:[%s4405_s5] sm:$0xff] }
 0x719   :  { %2938 = vmatprep.subr.mxu1 %v2623_v12 }
 0x71a   :  { %2939 = vmatpush3.msra.mxu1 %v2623_v12 }
 0x71b   :  { %2940 = vmatprep.subr.mxu1 %v2622_v13 }
 0x71c   :  { %2941 = vmatpush3.msra.mxu1 %v2622_v13 }
 0x7d5   :  { %v2922_v58 = vpop.f32.mrf.mxu1 }
 0x7d6   :  { %v1172_v26 = vadd.f32 %v2922_v58, %v2614_v16 }
 0x7d7   :  { %v1166_v21 = vpop.f32.mrf.mxu1 }
 0x7d8   :  { %v1176_v52 = vsub.f32 0.0, %v1172_v26  ;;  %v1167_v29 = vadd.f32 %v2614_v16, %v1166_v21  ;;  %v3945_v16 = vld [vmem:[%s4404_s4 + $0x10] sm:$0xff] }
 0x7da   :  { %v1179_v63 = vmul.f32 1.442695, %v1176_v52  ;;  %v1175_v1 = vsub.f32 0.0, %v1167_v29  ;;  %v3961_v52 = vld [vmem:[%s4404_s4 + $0x20] sm:$0xff] }
 0x7dc   :  { %3119 = vpow2.f32 %v1179_v63  ;;  %v1177_v30 = vmul.f32 1.442695, %v1175_v1  ;;  %v3970_v63 = vld [vmem:[%s4404_s4 + $0x28] sm:$0xff] }
 0x7de   :  { %3121 = vpow2.f32 %v1177_v30  ;;  %v3977_v30 = vld [vmem:[%s4404_s4 + $0x30] sm:$0xff] }
 0x7e9   :  { %v3120_v2 = vpop.eup %3119 }
 0x7ea   :  { %v1182_v33 = vadd.f32 1.0, %v3120_v2 }
 0x7eb   :  { %v3122_v23 = vpop.eup %3121 }
 0x7ec   :  { %v1181_v57 = vadd.f32 1.0, %v3122_v23  ;;  %3123 = vrcp.f32 %v1182_v33  ;;  %v3986_v33 = vld [vmem:[%s4404_s4 + $0x38] sm:$0xff] }
 0x7ee   :  { %3125 = vrcp.f32 %v1181_v57  ;;  %v3993_v57 = vld [vmem:[%s4404_s4 + $0x40] sm:$0xff] }
 0x7f9   :  { %v3124_v34 = vpop.eup %3123 }
 0x7fa   :  { %v1186_v9 = vmul.f32 %v3124_v34, %v1172_v26  ;;  %v3954_v26 = vld [vmem:[%s4404_s4 + $0x18] sm:$0xff] }
 0x7fb   :  { %v3126_v4 = vpop.eup %3125 }
 0x7fc   :  { %v1185_v37 = vmul.f32 %v3126_v4, %v1167_v29  ;;  %v4002_v4 = vld [vmem:[%s4404_s4 + $0x48] sm:$0xff] }
 0x7fe   :  { %2931 = vmatprep.mubr.msk.f32.mxu0 %vm206_vm1, %v1185_v37 }
 0x7ff   :  { %2932 = vmatmul.mubr.msk.f32.vlgmr.msra.gmra.mxu0 %vm206_vm1, %v1186_v9  ;;  %v4009_v9 = vld [vmem:[%s4404_s4 + $0x50] sm:$0xff] }
 0x8bf   :  { %v2933_v38 = vpop.f32.mrf.mxu0 }
 0x8c0   :  { %v1276_v0 = vadd.f32 %v2933_v38, %v2617_v17  ;;  %v4018_v38 = vld [vmem:[%s4404_s4 + $0x58] sm:$0xff] }
 0x8c1   :  { %v1270_v40 = vpop.f32.mrf.mxu0 }
 0x8c2   :  { %v1271_v41 = vadd.f32 %v2617_v17, %v1270_v40  ;;  %v1280_v42 = vadd.f32 %v1276_v0, %v1082_v55  ;;  %v4025_v40 = vld [vmem:[%s4404_s4 + $0x60] sm:$0xff] }
 0x8c4   :  { %v1286_v45 = vsel %vm206_vm1, %v1280_v42, 0.0  ;;  %v1279_v7 = vadd.f32 %v1271_v41, %v1081_v54  ;;  %v3926_v54 = vld [vmem:[%s4404_s4] sm:$0xff] }
 0x8c5   :  { %1287 = vadd.xlane.f32.xlu0 %v1286_v45 }
 0x8c6   :  { %v1283_v6 = vsel %vm206_vm1, %v1279_v7, 0.0 }
 0x8c7   :  { %1284 = vadd.xlane.f32.xlu1 %v1283_v6 }
 0x94e   :  { %v1288_v49 = vpop.xlane.xlu0 %1287 }
 0x94f   :  { %v1290_v46 = vmul.f32 0.03125, %v1288_v49  ;;  %v4050_v49 = vld [vmem:[%s4404_s4 + $0x78] sm:$0xff] }
 0x950   :  { %v1285_v15 = vpop.xlane.xlu1 %1284 }
 0x951   :  { %v1292_v48 = vsub.f32 %v1280_v42, %v1290_v46  ;;  %v1289_v20 = vmul.f32 0.03125, %v1285_v15  ;;  %v4034_v42 = vld [vmem:[%s4404_s4 + $0x68] sm:$0xff] }
 0x953   :  { %v1291_v60 = vsub.f32 %v1279_v7, %v1289_v20  ;;  %v1294_v51 = vmul.f32 %v1292_v48, %v1292_v48  ;;  %v4041_v7 = vld [vmem:[%s4404_s4 + $0x70] sm:$0xff] }
 0x955   :  { %v1298_v62 = vsel %vm206_vm1, %v1294_v51, 0.0  ;;  %v1293_v10 = vmul.f32 %v1291_v60, %v1291_v60  ;;  %v3227_v51 = vld [vmem:[%s4405_s5 + $0x8] sm:$0xff] }
 0x956   :  { %1299 = vadd.xlane.f32.xlu0 %v1298_v62 }
 0x957   :  { %v1295_v14 = vsel %vm206_vm1, %v1293_v10, 0.0 }
 0x958   :  { %1296 = vadd.xlane.f32.xlu1 %v1295_v14 }
 0x9df   :  { %v1300_v27 = vpop.xlane.xlu0 %1299 }
 0x9e0   :  { %v1302_v11 = vmul.f32 0.03125, %v1300_v27 }
 0x9e1   :  { %v1297_v61 = vpop.xlane.xlu1 %1296 }
 0x9e2   :  { %v1304_v18 = vadd.f32 1e-05, %v1302_v11  ;;  %v1301_v5 = vmul.f32 0.03125, %v1297_v61  ;;  %v3229_v61 = vld [vmem:[%s4405_s5 + $0x18] sm:$0xff] }
 0x9e4   :  { %3127 = vrsqrt.f32 %v1304_v18  ;;  %v1303_v36 = vadd.f32 1e-05, %v1301_v5 }
 0x9e6   :  { %3129 = vrsqrt.f32 %v1303_v36 }
 0x9f1   :  { %v3128_v24 = vpop.eup %3127 }
 0x9f2   :  { %v1308_v19 = vmul.f32 %v3128_v24, %v1292_v48 }
 0x9f3   :  { %v3130_v28 = vpop.eup %3129 }
 0x9f4   :  { %v1307_v35 = vmul.f32 %v3130_v28, %v1291_v60  ;;  %v1316_v47 = vmul.f32 %v2620_v31, %v1308_v19 }
 0x9f6   :  { %v1315_v44 = vmul.f32 %v2620_v31, %v1307_v35  ;;  %v3909_v43 = vadd.f32 %v2621_v32, %v1316_v47  ;;  %v3230_v31 = vld [vmem:[%s4405_s5 + $0x10] sm:$0xff] }
 0x9f8   :  { %v3907_v39 = vadd.f32 %v2621_v32, %v1315_v44  ;;  %v3231_v32 = vld [vmem:[%s4405_s5 + $0x28] sm:$0xff] }
 0x9fa   :  { %2942 = vmatprep.mubr.msk.f32.mxu1 %vm206_vm1, %v3907_v39 }
 0x9fb   :  { %2943 = vmatmul.mubr.msk.f32.vlgmr.msra.gmra.mxu1 %vm206_vm1, %v3909_v43 }
 0xabb   :  { %v3915_v53 = vpop.f32.mrf.mxu1 }
 0xabc   :  { %1431 = vrot.lane.b32.xlu1 %v3915_v53, %s3290_s27  ;;  %v1412_v59 = vmul.f32 %v3938_v25, %v3915_v53  ;;  %v1414_v21 = vmul.f32 %v3954_v26, %v3915_v53  ;;  %v1416_v1 = vmul.f32 %v3970_v63, %v3915_v53  ;;  %v1418_v23 = vmul.f32 %v3986_v33, %v3915_v53 }
 0xabd   :  { %v3919_v50 = vpop.f32.mrf.mxu1  ;;  %v1420_v37 = vmul.f32 %v4002_v4, %v3915_v53  ;;  %v1422_v0 = vmul.f32 %v4018_v38, %v3915_v53  ;;  %v1424_v45 = vmul.f32 %v4034_v42, %v3915_v53  ;;  %v1426_v46 = vmul.f32 %v4050_v49, %v3915_v53 }
 0xabe   :  { %1429 = vrot.lane.b32.xlu0 %v3919_v50, %s3290_s27  ;;  %v1411_v55 = vmul.f32 %v3926_v54, %v3919_v50  ;;  %v1413_v58 = vmul.f32 %v3945_v16, %v3919_v50  ;;  %v1415_v29 = vmul.f32 %v3961_v52, %v3919_v50  ;;  %v1417_v2 = vmul.f32 %v3977_v30, %v3919_v50 }
 0xabf   :  { %v1419_v34 = vmul.f32 %v3993_v57, %v3919_v50  ;;  %v1421_v17 = vmul.f32 %v4009_v9, %v3919_v50  ;;  %v1423_v41 = vmul.f32 %v4025_v40, %v3919_v50  ;;  %v1425_v6 = vmul.f32 %v4041_v7, %v3919_v50 }
 0xac0   :  { %2949 = vmatprep.mubr.msk.f32.mxu0 %vm206_vm1, %v1411_v55 }
 0xb2e   :  { %v1432_v3 = vpop.permute.xlu1 %1431 }
 0xb2f   :  { %2945 = vmatprep.subr.msk.mxu0 %vm206_vm1, %v1432_v3 }
 0xb30   :  { %2946 = vmatpush3.xpose.msk.msra.mxu0 %vm206_vm1, %v1432_v3  ;;  %v1430_v22 = vpop.permute.xlu0 %1429 }
 0xb31   :  { %2947 = vmatprep.subr.msk.mxu0 %vm206_vm1, %v1430_v22 }
 0xb34   :  { %2948 = vmatpush3.xpose.msk.msra.mxu0 %vm206_vm1, %v1430_v22 }
 0xb37   :  { %2950 = vmatmul.mubr.msk.f32.vlgmr.msra.gmra.mxu0 %vm206_vm1, %v1412_v59  ;;  %v3232_v59 = vld [vmem:[%s4405_s5 + $0x20] sm:$0xff] }
 0xb38   :  { %2952 = vmatprep.mubr.msk.f32.mxu0 %vm206_vm1, %v1413_v58 }
 0xb3b   :  { %2953 = vmatmul.mubr.msk.f32.gmra.mxu0 %vm206_vm1, %v1414_v21 }
 0xb3c   :  { %2955 = vmatprep.mubr.msk.f32.mxu0 %vm206_vm1, %v1415_v29 }
 0xb3f   :  { %2956 = vmatmul.mubr.msk.f32.gmra.mxu0 %vm206_vm1, %v1416_v1 }
 0xb40   :  { %2958 = vmatprep.mubr.msk.f32.mxu0 %vm206_vm1, %v1417_v2  ;;  %v3233_v2 = vld [vmem:[%s4405_s5 + $0x38] sm:$0xff] }
 0xb43   :  { %2959 = vmatmul.mubr.msk.f32.gmra.mxu0 %vm206_vm1, %v1418_v23 }
 0xb44   :  { %2961 = vmatprep.mubr.msk.f32.mxu0 %vm206_vm1, %v1419_v34 }
 0xb47   :  { %2962 = vmatmul.mubr.msk.f32.gmra.mxu0 %vm206_vm1, %v1420_v37 }
 0xb48   :  { %2964 = vmatprep.mubr.msk.f32.mxu0 %vm206_vm1, %v1421_v17 }
 0xb4b   :  { %2965 = vmatmul.mubr.msk.f32.gmra.mxu0 %vm206_vm1, %v1422_v0  ;;  %v3234_v0 = vld [vmem:[%s4405_s5 + $0x30] sm:$0xff] }
 0xb4c   :  { %2967 = vmatprep.mubr.msk.f32.mxu0 %vm206_vm1, %v1423_v41 }
 0xb4f   :  { %2968 = vmatmul.mubr.msk.f32.gmra.mxu0 %vm206_vm1, %v1424_v45 }
 0xb50   :  { %2970 = vmatprep.mubr.msk.f32.mxu0 %vm206_vm1, %v1425_v6 }
 0xb53   :  { %2971 = vmatmul.mubr.msk.f32.gmra.mxu0 %vm206_vm1, %v1426_v46 }
 0xbf7   :  { %v2951_v15 = vpop.f32.mrf.mxu0 }
 0xbf8   :  { %v1631_v48 = vmul.f32 0.5, %v2951_v15  ;;  %v3235_v15 = vld [vmem:[%s4405_s5 + $0x48] sm:$0xff] }
 0xbf9   :  { %v1551_v20 = vpop.f32.mrf.mxu0 }
 0xbfa   :  { %v1630_v60 = vmul.f32 0.5, %v1551_v20  ;;  %v4058_v62 = vadd.f32 %v3227_v51, %v1631_v48 }
 0xbfb   :  { %v2954_v10 = vpop.f32.mrf.mxu0 }
 0xbfc   :  { %v1633_v14 = vmul.f32 0.5, %v2954_v10  ;;  %v1665_v56 = vsel %vm86_vm0, %v4058_v62, -inf  ;;  %v4065_v12 = vadd.f32 %v3228_v8, %v1630_v60  ;;  %v3236_v10 = vld [vmem:[%s4405_s5 + $0x40] sm:$0xff] }
 0xbfd   :  { %1666 = vmax.xlane.f32.xlu0 %v1665_v56  ;;  %v1561_v13 = vpop.f32.mrf.mxu0 }
 0xbfe   :  { %v1632_v27 = vmul.f32 0.5, %v1561_v13  ;;  %v1662_v11 = vsel %vm86_vm0, %v4065_v12, -inf  ;;  %v4072_v18 = vadd.f32 %v3229_v61, %v1633_v14 }
 0xbff   :  { %1663 = vmax.xlane.f32.xlu1 %v1662_v11  ;;  %v2957_v5 = vpop.f32.mrf.mxu0 }
 0xc00   :  { %v1635_v36 = vmul.f32 0.5, %v2957_v5  ;;  %v1671_v24 = vsel %vm86_vm0, %v4072_v18, -inf  ;;  %v4079_v19 = vadd.f32 %v3230_v31, %v1632_v27  ;;  %v3237_v27 = vld [vmem:[%s4405_s5 + $0x58] sm:$0xff] }
 0xc01   :  { %1672 = vmax.xlane.f32.xlu0 %v1671_v24  ;;  %v1571_v28 = vpop.f32.mrf.mxu0  ;;  %v3238_v24 = vld [vmem:[%s4405_s5 + $0x50] sm:$0xff] }
 0xc02   :  { %v1634_v35 = vmul.f32 0.5, %v1571_v28  ;;  %v1668_v47 = vsel %vm86_vm0, %v4079_v19, -inf  ;;  %v4086_v44 = vadd.f32 %v3231_v32, %v1635_v36  ;;  %v3239_v32 = vld [vmem:[%s4405_s5 + $0x68] sm:$0xff] }
 0xc03   :  { %1669 = vmax.xlane.f32.xlu1 %v1668_v47  ;;  %v2960_v55 = vpop.f32.mrf.mxu0 }
 0xc04   :  { %v1637_v3 = vmul.f32 0.5, %v2960_v55  ;;  %v1677_v22 = vsel %vm86_vm0, %v4086_v44, -inf  ;;  %v4093_v58 = vadd.f32 %v3232_v59, %v1634_v35 }
 0xc05   :  { %1678 = vmax.xlane.f32.xlu0 %v1677_v22  ;;  %v1581_v21 = vpop.f32.mrf.mxu0 }
 0xc06   :  { %v1636_v29 = vmul.f32 0.5, %v1581_v21  ;;  %v1674_v1 = vsel %vm86_vm0, %v4093_v58, -inf  ;;  %v4100_v23 = vadd.f32 %v3233_v2, %v1637_v3  ;;  %v3240_v21 = vld [vmem:[%s4405_s5 + $0x60] sm:$0xff] }
 0xc07   :  { %1675 = vmax.xlane.f32.xlu1 %v1674_v1  ;;  %v2963_v34 = vpop.f32.mrf.mxu0 }
 0xc08   :  { %v1639_v37 = vmul.f32 0.5, %v2963_v34  ;;  %v1683_v17 = vsel %vm86_vm0, %v4100_v23, -inf  ;;  %v4107_v41 = vadd.f32 %v3234_v0, %v1636_v29 }
 0xc09   :  { %1684 = vmax.xlane.f32.xlu0 %v1683_v17  ;;  %v1591_v45 = vpop.f32.mrf.mxu0 }
 0xc0a   :  { %v1638_v6 = vmul.f32 0.5, %v1591_v45  ;;  %v1680_v46 = vsel %vm86_vm0, %v4107_v41, -inf  ;;  %v4114_v48 = vadd.f32 %v3235_v15, %v1639_v37  ;;  %v3241_v37 = vld [vmem:[%s4405_s5 + $0x78] sm:$0xff]  ;;  %v3242_v45 = vld [vmem:[%s4405_s5 + $0x70] sm:$0xff] }
 0xc0b   :  { %1681 = vmax.xlane.f32.xlu1 %v1680_v46  ;;  %v2966_v20 = vpop.f32.mrf.mxu0 }
 0xc0c   :  { %v1641_v60 = vmul.f32 0.5, %v2966_v20  ;;  %v1689_v51 = vsel %vm86_vm0, %v4114_v48, -inf  ;;  %v4121_v14 = vadd.f32 %v3236_v10, %v1638_v6 }
 0xc0d   :  { %1690 = vmax.xlane.f32.xlu0 %v1689_v51  ;;  %v1601_v56 = vpop.f32.mrf.mxu0 }
 0xc0e   :  { %v1640_v8 = vmul.f32 0.5, %v1601_v56  ;;  %v1686_v13 = vsel %vm86_vm0, %v4121_v14, -inf  ;;  %v4128_v11 = vadd.f32 %v3237_v27, %v1641_v60 }
 0xc0f   :  { %1687 = vmax.xlane.f32.xlu1 %v1686_v13  ;;  %v2969_v61 = vpop.f32.mrf.mxu0 }
 0xc10   :  { %v1643_v5 = vmul.f32 0.5, %v2969_v61  ;;  %v1695_v36 = vsel %vm86_vm0, %v4128_v11, -inf  ;;  %v4135_v31 = vadd.f32 %v3238_v24, %v1640_v8 }
 0xc11   :  { %1696 = vmax.xlane.f32.xlu0 %v1695_v36  ;;  %v1611_v28 = vpop.f32.mrf.mxu0 }
 0xc12   :  { %v1642_v35 = vmul.f32 0.5, %v1611_v28  ;;  %v1692_v47 = vsel %vm86_vm0, %v4135_v31, -inf  ;;  %v4142_v55 = vadd.f32 %v3239_v32, %v1643_v5 }
 0xc13   :  { %1693 = vmax.xlane.f32.xlu1 %v1692_v47  ;;  %v2972_v3 = vpop.f32.mrf.mxu0 }
 0xc14   :  { %v1645_v22 = vmul.f32 0.5, %v2972_v3  ;;  %v1701_v59 = vsel %vm86_vm0, %v4142_v55, -inf  ;;  %v4149_v29 = vadd.f32 %v3240_v21, %v1642_v35 }
 0xc15   :  { %1702 = vmax.xlane.f32.xlu0 %v1701_v59  ;;  %v1621_v1 = vpop.f32.mrf.mxu0 }
 0xc16   :  { %v1644_v2 = vmul.f32 0.5, %v1621_v1  ;;  %v1698_v34 = vsel %vm86_vm0, %v4149_v29, -inf  ;;  %v4156_v17 = vadd.f32 %v3241_v37, %v1645_v22 }
 0xc17   :  { %1699 = vmax.xlane.f32.xlu1 %v1698_v34 }
 0xc18   :  { %v1707_v0 = vsel %vm86_vm0, %v4156_v17, -inf  ;;  %v4163_v6 = vadd.f32 %v3242_v45, %v1644_v2 }
 0xc19   :  { %1708 = vmax.xlane.f32.xlu0 %v1707_v0 }
 0xc1a   :  { %v1704_v46 = vsel %vm86_vm0, %v4163_v6, -inf }
 0xc1b   :  { %1705 = vmax.xlane.f32.xlu1 %v1704_v46 }
 0xc2c   :  { %1840 = vrot.lane.b32.xlu1 %v3915_v53, %s3291_s25 }
 0xc2f   :  { %1838 = vrot.lane.b32.xlu0 %v3919_v50, %s3291_s25 }
 0xc86   :  { %v1667_v15 = vpop.xlane.xlu0 %1666 }
 0xc87   :  { %v1711_v20 = vsub.f32 %v4058_v62, %v1667_v15 }
 0xc88   :  { %v1664_v60 = vpop.xlane.xlu1 %1663 }
 0xc89   :  { %v1728_v51 = vmul.f32 1.442695, %v1711_v20  ;;  %v1710_v10 = vsub.f32 %v4065_v12, %v1664_v60 }
 0xc8a   :  { %v1673_v56 = vpop.xlane.xlu0 %1672 }
 0xc8b   :  { %3131 = vpow2.f32 %v1728_v51  ;;  %v1726_v8 = vmul.f32 1.442695, %v1710_v10  ;;  %v1713_v13 = vsub.f32 %v4072_v18, %v1673_v56 }
 0xc8c   :  { %v1670_v27 = vpop.xlane.xlu1 %1669 }
 0xc8d   :  { %3133 = vpow2.f32 %v1726_v8  ;;  %v1732_v61 = vmul.f32 1.442695, %v1713_v13  ;;  %v1712_v53 = vsub.f32 %v4079_v19, %v1670_v27 }
 0xc8e   :  { %v1679_v5 = vpop.xlane.xlu0 %1678 }
 0xc8f   :  { %3135 = vpow2.f32 %v1732_v61  ;;  %v1730_v50 = vmul.f32 1.442695, %v1712_v53  ;;  %v1715_v36 = vsub.f32 %v4086_v44, %v1679_v5 }
 0xc90   :  { %v1676_v62 = vpop.xlane.xlu1 %1675 }
 0xc91   :  { %3137 = vpow2.f32 %v1730_v50  ;;  %v1736_v24 = vmul.f32 1.442695, %v1715_v36  ;;  %v1714_v12 = vsub.f32 %v4093_v58, %v1676_v62 }
 0xc92   :  { %v1685_v28 = vpop.xlane.xlu0 %1684 }
 0xc93   :  { %3139 = vpow2.f32 %v1736_v24  ;;  %v1734_v35 = vmul.f32 1.442695, %v1714_v12  ;;  %v1717_v18 = vsub.f32 %v4100_v23, %v1685_v28 }
 0xc94   :  { %v1682_v47 = vpop.xlane.xlu1 %1681 }
 0xc95   :  { %3141 = vpow2.f32 %v1734_v35  ;;  %v1740_v32 = vmul.f32 1.442695, %v1717_v18  ;;  %v1716_v19 = vsub.f32 %v4107_v41, %v1682_v47 }
 0xc96   :  { %v1691_v3 = vpop.xlane.xlu0 %1690 }
 0xc97   :  { %3143 = vpow2.f32 %v1740_v32  ;;  %v1738_v22 = vmul.f32 1.442695, %v1716_v19  ;;  %v1719_v44 = vsub.f32 %v4114_v48, %v1691_v3 }
 0xc98   :  { %v4180_v59 = vpop.eup %3131  ;;  %v1688_v21 = vpop.xlane.xlu1 %1687 }
 0xc99   :  { %3145 = vpow2.f32 %v1738_v22  ;;  %v1744_v58 = vmul.f32 1.442695, %v1719_v44  ;;  %v1718_v1 = vsub.f32 %v4121_v14, %v1688_v21  ;;  %v1761_v23 = vsel %vm86_vm0, %v4180_v59, 0.0 }
 0xc9a   :  { %v4185_v2 = vpop.eup %3133  ;;  %v1697_v34 = vpop.xlane.xlu0 %1696  ;;  %1762 = vadd.xlane.f32.xlu0 %v1761_v23 }
 0xc9b   :  { %3147 = vpow2.f32 %v1744_v58  ;;  %v1742_v41 = vmul.f32 1.442695, %v1718_v1  ;;  %v1721_v37 = vsub.f32 %v4128_v11, %v1697_v34  ;;  %v1758_v48 = vsel %vm86_vm0, %v4185_v2, 0.0 }
 0xc9c   :  { %v4190_v0 = vpop.eup %3135  ;;  %v1694_v45 = vpop.xlane.xlu1 %1693  ;;  %1759 = vadd.xlane.f32.xlu1 %v1758_v48 }
 0xc9d   :  { %3149 = vpow2.f32 %v1742_v41  ;;  %v1748_v14 = vmul.f32 1.442695, %v1721_v37  ;;  %v1720_v46 = vsub.f32 %v4135_v31, %v1694_v45  ;;  %v1767_v15 = vsel %vm86_vm0, %v4190_v0, 0.0 }
 0xc9e   :  { %v4195_v20 = vpop.eup %3137  ;;  %v1703_v60 = vpop.xlane.xlu0 %1702  ;;  %1768 = vadd.xlane.f32.xlu0 %v1767_v15 }
 0xc9f   :  { %3151 = vpow2.f32 %v1748_v14  ;;  %v1746_v11 = vmul.f32 1.442695, %v1720_v46  ;;  %v1723_v51 = vsub.f32 %v4142_v55, %v1703_v60  ;;  %v1764_v10 = vsel %vm86_vm0, %v4195_v20, 0.0 }
 0xca0   :  { %v4200_v56 = vpop.eup %3139  ;;  %v1700_v8 = vpop.xlane.xlu1 %1699  ;;  %1765 = vadd.xlane.f32.xlu1 %v1764_v10 }
 0xca1   :  { %3153 = vpow2.f32 %v1746_v11  ;;  %v1752_v31 = vmul.f32 1.442695, %v1723_v51  ;;  %v1722_v13 = vsub.f32 %v4149_v29, %v1700_v8  ;;  %v1773_v27 = vsel %vm86_vm0, %v4200_v56, 0.0 }
 0xca2   :  { %v4205_v61 = vpop.eup %3141  ;;  %1774 = vadd.xlane.f32.xlu0 %v1773_v27  ;;  %v1709_v53 = vpop.xlane.xlu0 %1708 }
 0xca3   :  { %3155 = vpow2.f32 %v1752_v31  ;;  %v1750_v55 = vmul.f32 1.442695, %v1722_v13  ;;  %v1725_v5 = vsub.f32 %v4156_v17, %v1709_v53  ;;  %v1770_v50 = vsel %vm86_vm0, %v4205_v61, 0.0 }
 0xca4   :  { %v4210_v36 = vpop.eup %3143  ;;  %1771 = vadd.xlane.f32.xlu1 %v1770_v50  ;;  %v1706_v62 = vpop.xlane.xlu1 %1705 }
 0xca5   :  { %3157 = vpow2.f32 %v1750_v55  ;;  %v1756_v29 = vmul.f32 1.442695, %v1725_v5  ;;  %v1724_v24 = vsub.f32 %v4163_v6, %v1706_v62  ;;  %v1779_v12 = vsel %vm86_vm0, %v4210_v36, 0.0 }
 0xca6   :  { %v4215_v28 = vpop.eup %3145  ;;  %1780 = vadd.xlane.f32.xlu0 %v1779_v12  ;;  %v1839_v19 = vpop.permute.xlu0 %1838 }
 0xca7   :  { %3159 = vpow2.f32 %v1756_v29  ;;  %v1754_v35 = vmul.f32 1.442695, %v1724_v24  ;;  %v1776_v17 = vsel %vm86_vm0, %v4215_v28, 0.0 }
 0xca8   :  { %v4219_v18 = vpop.eup %3147  ;;  %1777 = vadd.xlane.f32.xlu1 %v1776_v17  ;;  %v1841_v47 = vpop.permute.xlu1 %1840 }
 0xca9   :  { %3161 = vpow2.f32 %v1754_v35  ;;  %2973 = vmatprep.subr.mxu1 %v1841_v47  ;;  %v1785_v6 = vsel %vm86_vm0, %v4219_v18, 0.0 }
 0xcaa   :  { %v4223_v32 = vpop.eup %3149  ;;  %1786 = vadd.xlane.f32.xlu0 %v1785_v6  ;;  %2974 = vmatpush3.msra.mxu1 %v1841_v47 }
 0xcab   :  { %2975 = vmatprep.subr.mxu1 %v1839_v19  ;;  %v1782_v3 = vsel %vm86_vm0, %v4223_v32, 0.0 }
 0xcac   :  { %v4227_v22 = vpop.eup %3151  ;;  %1783 = vadd.xlane.f32.xlu1 %v1782_v3  ;;  %2976 = vmatpush3.msra.mxu1 %v1839_v19 }
 0xcad   :  { %v1791_v44 = vsel %vm86_vm0, %v4227_v22, 0.0 }
 0xcae   :  { %v4231_v21 = vpop.eup %3153  ;;  %1792 = vadd.xlane.f32.xlu0 %v1791_v44 }
 0xcaf   :  { %v1788_v58 = vsel %vm86_vm0, %v4231_v21, 0.0 }
 0xcb0   :  { %v4235_v1 = vpop.eup %3155  ;;  %1789 = vadd.xlane.f32.xlu1 %v1788_v58 }
 0xcb1   :  { %v1797_v23 = vsel %vm86_vm0, %v4235_v1, 0.0 }
 0xcb2   :  { %v4239_v34 = vpop.eup %3157  ;;  %1798 = vadd.xlane.f32.xlu0 %v1797_v23 }
 0xcb3   :  { %v1794_v41 = vsel %vm86_vm0, %v4239_v34, 0.0 }
 0xcb4   :  { %v4243_v37 = vpop.eup %3159  ;;  %1795 = vadd.xlane.f32.xlu1 %v1794_v41 }
 0xcb5   :  { %v1803_v48 = vsel %vm86_vm0, %v4243_v37, 0.0 }
 0xcb6   :  { %v4247_v45 = vpop.eup %3161  ;;  %1804 = vadd.xlane.f32.xlu0 %v1803_v48 }
 0xcb7   :  { %v1800_v14 = vsel %vm86_vm0, %v4247_v45, 0.0 }
 0xcb8   :  { %1801 = vadd.xlane.f32.xlu1 %v1800_v14 }
 0xd23   :  { %v1763_v46 = vpop.xlane.xlu0 %1762 }
 0xd24   :  { %3163 = vrcp.f32 %v1763_v46 }
 0xd25   :  { %v1760_v15 = vpop.xlane.xlu1 %1759 }
 0xd26   :  { %3165 = vrcp.f32 %v1760_v15 }
 0xd27   :  { %v1769_v60 = vpop.xlane.xlu0 %1768 }
 0xd28   :  { %3167 = vrcp.f32 %v1769_v60 }
 0xd29   :  { %v1766_v11 = vpop.xlane.xlu1 %1765 }
 0xd2a   :  { %3169 = vrcp.f32 %v1766_v11 }
 0xd2b   :  { %v1775_v51 = vpop.xlane.xlu0 %1774 }
 0xd2c   :  { %3171 = vrcp.f32 %v1775_v51 }
 0xd2d   :  { %v1772_v10 = vpop.xlane.xlu1 %1771 }
 0xd2e   :  { %3173 = vrcp.f32 %v1772_v10 }
 0xd2f   :  { %v1781_v8 = vpop.xlane.xlu0 %1780 }
 0xd30   :  { %3175 = vrcp.f32 %v1781_v8 }
 0xd31   :  { %v1778_v31 = vpop.xlane.xlu1 %1777  ;;  %v3164_v13 = vpop.eup %3163 }
 0xd32   :  { %3177 = vrcp.f32 %v1778_v31  ;;  %v1823_v50 = vmul.f32 %v3164_v13, %v4180_v59 }
 0xd33   :  { %v3166_v27 = vpop.eup %3165  ;;  %v1787_v53 = vpop.xlane.xlu0 %1786 }
 0xd34   :  { %v1822_v55 = vmul.f32 %v3166_v27, %v4185_v2  ;;  %3179 = vrcp.f32 %v1787_v53 }
 0xd35   :  { %v1784_v5 = vpop.xlane.xlu1 %1783  ;;  %v3168_v62 = vpop.eup %3167 }
 0xd36   :  { %3181 = vrcp.f32 %v1784_v5  ;;  %2977 = vmatprep.mubr.msk.f32.mxu1 %vm86_vm0, %v1822_v55  ;;  %v1825_v17 = vmul.f32 %v3168_v62, %v4190_v0 }
 0xd37   :  { %v3170_v29 = vpop.eup %3169  ;;  %v1793_v24 = vpop.xlane.xlu0 %1792  ;;  %2978 = vmatmul.mubr.msk.f32.vlgmr.msra.gmra.mxu1 %vm86_vm0, %v1823_v50 }
 0xd38   :  { %v1824_v12 = vmul.f32 %v3170_v29, %v4195_v20  ;;  %3183 = vrcp.f32 %v1793_v24 }
 0xd39   :  { %v1790_v35 = vpop.xlane.xlu1 %1789  ;;  %v3172_v47 = vpop.eup %3171 }
 0xd3a   :  { %3185 = vrcp.f32 %v1790_v35  ;;  %2980 = vmatprep.mubr.msk.f32.mxu1 %vm86_vm0, %v1824_v12  ;;  %v1827_v3 = vmul.f32 %v3172_v47, %v4200_v56 }
 0xd3b   :  { %v3174_v2 = vpop.eup %3173  ;;  %v1799_v59 = vpop.xlane.xlu0 %1798  ;;  %2981 = vmatmul.mubr.msk.f32.gmra.mxu1 %vm86_vm0, %v1825_v17 }
 0xd3c   :  { %v1826_v6 = vmul.f32 %v3174_v2, %v4205_v61  ;;  %3187 = vrcp.f32 %v1799_v59 }
 0xd3d   :  { %v1796_v19 = vpop.xlane.xlu1 %1795  ;;  %v3176_v44 = vpop.eup %3175 }
 0xd3e   :  { %3189 = vrcp.f32 %v1796_v19  ;;  %2983 = vmatprep.mubr.msk.f32.mxu1 %vm86_vm0, %v1826_v6  ;;  %v1829_v41 = vmul.f32 %v3176_v44, %v4210_v36 }
 0xd3f   :  { %v3178_v20 = vpop.eup %3177  ;;  %v1805_v0 = vpop.xlane.xlu0 %1804  ;;  %2984 = vmatmul.mubr.msk.f32.gmra.mxu1 %vm86_vm0, %v1827_v3 }
 0xd40   :  { %v1828_v58 = vmul.f32 %v3178_v20, %v4215_v28  ;;  %3191 = vrcp.f32 %v1805_v0 }
 0xd41   :  { %v1802_v23 = vpop.xlane.xlu1 %1801  ;;  %v3180_v48 = vpop.eup %3179 }
 0xd42   :  { %3193 = vrcp.f32 %v1802_v23  ;;  %2986 = vmatprep.mubr.msk.f32.mxu1 %vm86_vm0, %v1828_v58  ;;  %v1831_v14 = vmul.f32 %v3180_v48, %v4219_v18 }
 0xd43   :  { %v3182_v61 = vpop.eup %3181  ;;  %2987 = vmatmul.mubr.msk.f32.gmra.mxu1 %vm86_vm0, %v1829_v41 }
 0xd44   :  { %v1830_v56 = vmul.f32 %v3182_v61, %v4223_v32 }
 0xd45   :  { %v3184_v46 = vpop.eup %3183 }
 0xd46   :  { %2989 = vmatprep.mubr.msk.f32.mxu1 %vm86_vm0, %v1830_v56  ;;  %v1833_v36 = vmul.f32 %v3184_v46, %v4227_v22 }
 0xd47   :  { %v3186_v15 = vpop.eup %3185  ;;  %2990 = vmatmul.mubr.msk.f32.gmra.mxu1 %vm86_vm0, %v1831_v14 }
 0xd48   :  { %v1832_v28 = vmul.f32 %v3186_v15, %v4231_v21 }
 0xd49   :  { %v3188_v60 = vpop.eup %3187 }
 0xd4a   :  { %2992 = vmatprep.mubr.msk.f32.mxu1 %vm86_vm0, %v1832_v28  ;;  %v1835_v18 = vmul.f32 %v3188_v60, %v4235_v1  ;;  %v2664_v1 = vld [vmem:[%s4407_s7 + $0x30] sm:$0xff] }
 0xd4b   :  { %v3190_v11 = vpop.eup %3189  ;;  %2993 = vmatmul.mubr.msk.f32.gmra.mxu1 %vm86_vm0, %v1833_v36 }
 0xd4c   :  { %v1834_v32 = vmul.f32 %v3190_v11, %v4239_v34  ;;  %v2665_v34 = vld [vmem:[%s4407_s7 + $0x38] sm:$0xff] }
 0xd4d   :  { %v3192_v51 = vpop.eup %3191  ;;  %3001 = vmatprep.subr.mxu1 %v2665_v34 }
 0xd4e   :  { %2995 = vmatprep.mubr.msk.f32.mxu1 %vm86_vm0, %v1834_v32  ;;  %v1837_v22 = vmul.f32 %v3192_v51, %v4243_v37  ;;  %3002 = vmatpush3.msra.mxu1 %v2665_v34  ;;  %v2663_v37 = vld [vmem:[%s4407_s7 + $0x28] sm:$0xff] }
 0xd4f   :  { %v3194_v10 = vpop.eup %3193  ;;  %2996 = vmatmul.mubr.msk.f32.gmra.mxu1 %vm86_vm0, %v1835_v18  ;;  %3003 = vmatprep.subr.mxu1 %v2664_v1 }
 0xd50   :  { %v1836_v21 = vmul.f32 %v3194_v10, %v4247_v45  ;;  %3004 = vmatpush3.msra.mxu1 %v2664_v1  ;;  %v2662_v45 = vld [vmem:[%s4407_s7 + $0x20] sm:$0xff]  ;;  %v2677_v10 = vld [vmem:[%s4411_s11 + $0x38] sm:$0xff] }
 0xd51   :  { %3005 = vmatprep.subr.mxu1 %v2663_v37  ;;  %3012 = vmatprep.subr.mxu0 %v2677_v10 }
 0xd52   :  { %2998 = vmatprep.mubr.msk.f32.mxu1 %vm86_vm0, %v1836_v21  ;;  %3006 = vmatpush3.msra.mxu1 %v2663_v37 }
 0xd53   :  { %2999 = vmatmul.mubr.msk.f32.gmra.mxu1 %vm86_vm0, %v1837_v22  ;;  %3007 = vmatprep.subr.mxu1 %v2662_v45 }
 0xd54   :  { %3008 = vmatpush3.msra.mxu1 %v2662_v45  ;;  %3013 = vmatpush3.msra.mxu0 %v2677_v10 }
 0xdf7   :  { %v2979_v8 = vpop.f32.mrf.mxu1 }
 0xdf8   :  { %v2038_v47 = vmul.f32 %v3938_v25, %v2979_v8 }
 0xdf9   :  { %v1958_v31 = vpop.f32.mrf.mxu1 }
 0xdfa   :  { %v2037_v35 = vmul.f32 %v3926_v54, %v1958_v31 }
 0xdfb   :  { %v2982_v13 = vpop.f32.mrf.mxu1 }
 0xdfc   :  { %v2040_v24 = vmul.f32 %v3954_v26, %v2982_v13  ;;  %v2676_v13 = vld [vmem:[%s4411_s11 + $0x30] sm:$0xff] }
 0xdfd   :  { %v1968_v27 = vpop.f32.mrf.mxu1  ;;  %3014 = vmatprep.subr.mxu0 %v2676_v13 }
 0xdfe   :  { %v2039_v29 = vmul.f32 %v3945_v16, %v1968_v27  ;;  %v2054_v3 = vadd.f32 %v2040_v24, %v2038_v47  ;;  %v2675_v27 = vld [vmem:[%s4411_s11 + $0x28] sm:$0xff]  ;;  %3015 = vmatpush3.msra.mxu0 %v2676_v13 }
 0xdff   :  { %v2985_v53 = vpop.f32.mrf.mxu1  ;;  %3016 = vmatprep.subr.mxu0 %v2675_v27 }
 0xe00   :  { %v2042_v2 = vmul.f32 %v3970_v63, %v2985_v53  ;;  %v2053_v6 = vadd.f32 %v2039_v29, %v2037_v35  ;;  %v2674_v53 = vld [vmem:[%s4411_s11 + $0x20] sm:$0xff]  ;;  %3017 = vmatpush3.msra.mxu0 %v2675_v27 }
 0xe01   :  { %v1978_v55 = vpop.f32.mrf.mxu1  ;;  %3018 = vmatprep.subr.mxu0 %v2674_v53  ;;  %v2672_v35 = vld [vmem:[%s4409_s9 + $0x1] ss:$0 sm:$0xff] }
 0xe02   :  { %v2041_v17 = vmul.f32 %v3961_v52, %v1978_v55  ;;  %v2056_v0 = vadd.f32 %v2054_v3, %v2042_v2  ;;  %3019 = vmatpush3.msra.mxu0 %v2674_v53 }
 0xe03   :  { %v2988_v5 = vpop.f32.mrf.mxu1 }
 0xe04   :  { %v2044_v44 = vmul.f32 %v3986_v33, %v2988_v5  ;;  %v2055_v16 = vadd.f32 %v2053_v6, %v2041_v17  ;;  %v2673_v6 = vld [vmem:[%s4410_s10 + $0x1] ss:$0 sm:$0xff] }
 0xe05   :  { %v1988_v50 = vpop.f32.mrf.mxu1 }
 0xe06   :  { %v2043_v19 = vmul.f32 %v3977_v30, %v1988_v50  ;;  %v2058_v23 = vadd.f32 %v2056_v0, %v2044_v44  ;;  %v2682_v0 = vld [vmem:[%s4413_s13 + $0x20] sm:$0xff] }
 0xe07   :  { %v2991_v62 = vpop.f32.mrf.mxu1 }
 0xe08   :  { %v2046_v54 = vmul.f32 %v4002_v4, %v2991_v62  ;;  %v2057_v52 = vadd.f32 %v2055_v16, %v2043_v19  ;;  %v2684_v16 = vld [vmem:[%s4413_s13 + $0x30] sm:$0xff] }
 0xe09   :  { %v1998_v12 = vpop.f32.mrf.mxu1 }
 0xe0a   :  { %v2045_v26 = vmul.f32 %v3993_v57, %v1998_v12  ;;  %v2060_v61 = vadd.f32 %v2058_v23, %v2046_v54  ;;  %v2679_v54 = vld [vmem:[%s4412_s12 + $0x1] ss:$0 sm:$0xff] }
 0xe0b   :  { %v2994_v59 = vpop.f32.mrf.mxu1 }
 0xe0c   :  { %v2048_v63 = vmul.f32 %v4018_v38, %v2994_v59  ;;  %v2059_v48 = vadd.f32 %v2057_v52, %v2045_v26  ;;  %v2667_v38 = vld [vmem:[%s4408_s8 + $0x1] ss:$0 sm:$0xff]  ;;  %v2683_v26 = vld [vmem:[%s4413_s13 + $0x28] sm:$0xff] }
 0xe0d   :  { %v2008_v20 = vpop.f32.mrf.mxu1 }
 0xe0e   :  { %v2047_v25 = vmul.f32 %v4009_v9, %v2008_v20  ;;  %v2062_v57 = vadd.f32 %v2060_v61, %v2048_v63  ;;  %v2685_v20 = vld [vmem:[%s4413_s13 + $0x38] sm:$0xff] }
 0xe0f   :  { %v2997_v58 = vpop.f32.mrf.mxu1  ;;  %3023 = vmatprep.subr.mxu1 %v2685_v20 }
 0xe10   :  { %v2050_v33 = vmul.f32 %v4034_v42, %v2997_v58  ;;  %v2061_v14 = vadd.f32 %v2059_v48, %v2047_v25 }
 0xe11   :  { %v2018_v41 = vpop.f32.mrf.mxu1 }
 0xe12   :  { %v2049_v30 = vmul.f32 %v4025_v40, %v2018_v41  ;;  %v2064_v9 = vadd.f32 %v2062_v57, %v2050_v33 }
 0xe13   :  { %v3000_v56 = vpop.f32.mrf.mxu1 }
 0xe14   :  { %v2052_v46 = vmul.f32 %v4050_v49, %v3000_v56  ;;  %v2063_v15 = vadd.f32 %v2061_v14, %v2049_v30 }
 0xe15   :  { %v2028_v4 = vpop.f32.mrf.mxu1 }
 0xe16   :  { %v2051_v28 = vmul.f32 %v4041_v7, %v2028_v4  ;;  %v2066_v60 = vadd.f32 %v2064_v9, %v2052_v46 }
 0xe18   :  { %v2065_v36 = vadd.f32 %v2063_v15, %v2051_v28  ;;  %v2687_v28 = vld [vmem:[%s4414_s14 + $0x1] ss:$0 sm:$0xff] }
 0xe1a   :  { %3009 = vmatprep.mubr.msk.f32.mxu1 %vm206_vm1, %v2065_v36 }
 0xe1b   :  { %3010 = vmatmul.mubr.msk.f32.vlgmr.msra.gmra.mxu1 %vm206_vm1, %v2066_v60 }
 0xe1c   :  { %3024 = vmatpush3.msra.mxu1 %v2685_v20  ;;  %v3243_v20 = vld [vmem:[%s4427_s29 + $0x8] sm:$0xff] }
 0xe1d   :  { %3025 = vmatprep.subr.mxu1 %v2684_v16 }
 0xe1e   :  { %3026 = vmatpush3.msra.mxu1 %v2684_v16 }
 0xe1f   :  { %3027 = vmatprep.subr.mxu1 %v2683_v26 }
 0xe20   :  { %3028 = vmatpush3.msra.mxu1 %v2683_v26 }
 0xe21   :  { %3029 = vmatprep.subr.mxu1 %v2682_v0 }
 0xe22   :  { %3030 = vmatpush3.msra.mxu1 %v2682_v0  ;;  %v3244_v0 = vld [vmem:[%s4427_s29] sm:$0xff] }
 0xedb   :  { %v3011_v40 = vpop.f32.mrf.mxu1 }
 0xedc   :  { %v2158_v42 = vadd.f32 %v3011_v40, %v2667_v38 }
 0xedd   :  { %v2152_v11 = vpop.f32.mrf.mxu1 }
 0xede   :  { %v2153_v32 = vadd.f32 %v2667_v38, %v2152_v11  ;;  %v2162_v49 = vadd.f32 %v2158_v42, %v3909_v43 }
 0xee0   :  { %v2170_v18 = vsel %vm206_vm1, %v2162_v49, 0.0  ;;  %v2161_v7 = vadd.f32 %v2153_v32, %v3907_v39 }
 0xee1   :  { %2171 = vadd.xlane.f32.xlu0 %v2170_v18 }
 0xee2   :  { %v2167_v51 = vsel %vm206_vm1, %v2161_v7, 0.0 }
 0xee3   :  { %2168 = vadd.xlane.f32.xlu1 %v2167_v51 }
 0xf6a   :  { %v2172_v21 = vpop.xlane.xlu0 %2171 }
 0xf6b   :  { %v2174_v22 = vmul.f32 0.03125, %v2172_v21 }
 0xf6c   :  { %v2169_v34 = vpop.xlane.xlu1 %2168 }
 0xf6d   :  { %v2176_v1 = vsub.f32 %v2162_v49, %v2174_v22  ;;  %v2173_v37 = vmul.f32 0.03125, %v2169_v34 }
 0xf6f   :  { %v2175_v43 = vsub.f32 %v2161_v7, %v2173_v37  ;;  %v2178_v45 = vmul.f32 %v2176_v1, %v2176_v1 }
 0xf71   :  { %v2182_v8 = vsel %vm206_vm1, %v2178_v45, 0.0  ;;  %v2177_v39 = vmul.f32 %v2175_v43, %v2175_v43  ;;  %v2459_v45 = vld [vmem:[%s4417_s17 + $0x10] sm:$0xff] }
 0xf72   :  { %2183 = vadd.xlane.f32.xlu0 %v2182_v8  ;;  %v2458_v8 = vld [vmem:[%s4417_s17 + $0x8] sm:$0xff] }
 0xf73   :  { %v2179_v31 = vsel %vm206_vm1, %v2177_v39, 0.0  ;;  %v2457_v39 = vld [vmem:[%s4417_s17] sm:$0xff] }
 0xf74   :  { %2180 = vadd.xlane.f32.xlu1 %v2179_v31 }
 0xffb   :  { %v2184_v55 = vpop.xlane.xlu0 %2183 }
 0xffc   :  { %v2186_v5 = vmul.f32 0.03125, %v2184_v55 }
 0xffd   :  { %v2181_v50 = vpop.xlane.xlu1 %2180 }
 0xffe   :  { %v2188_v62 = vadd.f32 1e-05, %v2186_v5  ;;  %v2185_v29 = vmul.f32 0.03125, %v2181_v50 }
0x1000   :  { %3195 = vrsqrt.f32 %v2188_v62  ;;  %v2187_v24 = vadd.f32 1e-05, %v2185_v29  ;;  %v2692_v62 = vld [vmem:[%s4415_s15 + $0x1] ss:$0 sm:$0xff]  ;;  %s3292_s15 = smov [#allocation5]  }
0x1001   :  { %s2558_s4 = sshll.u32 %s3292_s15, 4  ;;  %s2559_s4 = int_to_ptr.vmem [resolvable:$true] %s2558_s4 }
0x1002   :  { %3197 = vrsqrt.f32 %v2187_v24  ;;  %p3270_p6 = scmp.lt.s32.totalorder %s2559_s4, %s2559_s4 }
0x100d   :  { %v3196_v12 = vpop.eup %3195 }
0x100e   :  { %v2192_v17 = vmul.f32 %v3196_v12, %v2176_v1 }
0x100f   :  { %v3198_v47 = vpop.eup %3197 }
0x1010   :  { %v2191_v2 = vmul.f32 %v3198_v47, %v2175_v43  ;;  %v2200_v59 = vmul.f32 %v2672_v35, %v2192_v17  ;;  %v2460_v43 = vld [vmem:[%s4417_s17 + $0x18] sm:$0xff]  ;;  %v2693_v17 = vld [vmem:[%s4416_s16 + $0x1] ss:$0 sm:$0xff] }
0x1011   :  { %3034 = vmatprep.subr.mxu0 %v2460_v43 }
0x1012   :  { %v2199_v19 = vmul.f32 %v2672_v35, %v2191_v2  ;;  %v2208_v44 = vadd.f32 %v2673_v6, %v2200_v59 }
0x1014   :  { %v2207_v3 = vadd.f32 %v2673_v6, %v2199_v19  ;;  %v2694_v6 = vld [vmem:[%s4418_s18] ss:$0 sm:$0xff]  ;;  %s3265_s18 = scalar_lea.vmem %s2559_s4, 256 }
0x1015   :  { %p3266_p5 = scmp.ne.s32.totalorder %s2559_s4, %s3265_s18  ;;  %p3271_p7 = scmp.lt.s32.totalorder %s3265_s18, %s3265_s18 }
0x1016   :  { %3020 = vmatprep.mubr.msk.f32.mxu0 %vm206_vm1, %v2207_v3 }
0x1017   :  { %3021 = vmatmul.mubr.msk.f32.vlgmr.msra.gmra.mxu0 %vm206_vm1, %v2208_v44  ;;  %p3272_p8 = por %p3271_p7, %p3270_p6 }
0x1018   :  { %3035 = vmatpush3.msra.mxu0 %v2460_v43 }
0x1019   :  { %3036 = vmatprep.subr.mxu0 %v2459_v45  ;;  %p3273_p9 = pnand %p3272_p8, %p3266_p5 }
0x101a   :  { %3037 = vmatpush3.msra.mxu0 %v2459_v45 }
0x101b   :  { %3038 = vmatprep.subr.mxu0 %v2458_v8 }
0x101c   :  { %3039 = vmatpush3.msra.mxu0 %v2458_v8 }
0x101d   :  { %3040 = vmatprep.subr.mxu0 %v2457_v39 }
0x101e   :  { %3041 = vmatpush3.msra.mxu0 %v2457_v39 }
0x10d7   :  { %v3022_v58 = vpop.f32.mrf.mxu0 }
0x10d8   :  { %v2300_v52 = vadd.f32 %v3022_v58, %v2679_v54 }
0x10d9   :  { %v2294_v25 = vpop.f32.mrf.mxu0 }
0x10da   :  { %v2304_v23 = vsub.f32 0.0, %v2300_v52  ;;  %v2295_v63 = vadd.f32 %v2679_v54, %v2294_v25 }
0x10dc   :  { %v2307_v41 = vmul.f32 1.442695, %v2304_v23  ;;  %v2303_v48 = vsub.f32 0.0, %v2295_v63 }
0x10de   :  { %3199 = vpow2.f32 %v2307_v41  ;;  %v2305_v30 = vmul.f32 1.442695, %v2303_v48 }
0x10e0   :  { %3201 = vpow2.f32 %v2305_v30 }
0x10eb   :  { %v3200_v61 = vpop.eup %3199 }
0x10ec   :  { %v2310_v33 = vadd.f32 1.0, %v3200_v61 }
0x10ed   :  { %v3202_v56 = vpop.eup %3201 }
0x10ee   :  { %v2309_v14 = vadd.f32 1.0, %v3202_v56  ;;  %3203 = vrcp.f32 %v2310_v33 }
0x10f0   :  { %3205 = vrcp.f32 %v2309_v14 }
0x10fb   :  { %v3204_v57 = vpop.eup %3203 }
0x10fc   :  { %v2314_v15 = vmul.f32 %v3204_v57, %v2300_v52 }
0x10fd   :  { %v3206_v46 = vpop.eup %3205 }
0x10fe   :  { %v2313_v4 = vmul.f32 %v3206_v46, %v2295_v63 }
0x1100   :  { %3031 = vmatprep.mubr.msk.f32.mxu1 %vm206_vm1, %v2313_v4 }
0x1101   :  { %3032 = vmatmul.mubr.msk.f32.vlgmr.msra.gmra.mxu1 %vm206_vm1, %v2314_v15 }
0x11c1   :  { %v3033_v9 = vpop.f32.mrf.mxu1 }
0x11c2   :  { %v2406_v36 = vadd.f32 %v3033_v9, %v2687_v28 }
0x11c3   :  { %v2400_v60 = vpop.f32.mrf.mxu1 }
0x11c4   :  { %v2401_v38 = vadd.f32 %v2687_v28, %v2400_v60  ;;  %v2410_v40 = vadd.f32 %v2406_v36, %v2208_v44 }
0x11c6   :  { %v2418_v42 = vsel %vm206_vm1, %v2410_v40, 0.0  ;;  %v2409_v11 = vadd.f32 %v2401_v38, %v2207_v3 }
0x11c7   :  { %2419 = vadd.xlane.f32.xlu0 %v2418_v42 }
0x11c8   :  { %v2415_v32 = vsel %vm206_vm1, %v2409_v11, 0.0 }
0x11c9   :  { %2416 = vadd.xlane.f32.xlu1 %v2415_v32 }
0x1250   :  { %v2420_v49 = vpop.xlane.xlu0 %2419 }
0x1251   :  { %v2422_v18 = vmul.f32 0.03125, %v2420_v49 }
0x1252   :  { %v2417_v7 = vpop.xlane.xlu1 %2416 }
0x1253   :  { %v2424_v51 = vsub.f32 %v2410_v40, %v2422_v18  ;;  %v2421_v10 = vmul.f32 0.03125, %v2417_v7 }
0x1255   :  { %v2423_v21 = vsub.f32 %v2409_v11, %v2421_v10  ;;  %v2426_v22 = vmul.f32 %v2424_v51, %v2424_v51 }
0x1257   :  { %v2430_v34 = vsel %vm206_vm1, %v2426_v22, 0.0  ;;  %v2425_v1 = vmul.f32 %v2423_v21, %v2423_v21 }
0x1258   :  { %2431 = vadd.xlane.f32.xlu0 %v2430_v34 }
0x1259   :  { %v2427_v37 = vsel %vm206_vm1, %v2425_v1, 0.0 }
0x125a   :  { %2428 = vadd.xlane.f32.xlu1 %v2427_v37 }
0x12e1   :  { %v2432_v31 = vpop.xlane.xlu0 %2431 }
0x12e2   :  { %v2434_v13 = vmul.f32 0.03125, %v2432_v31 }
0x12e3   :  { %v2429_v27 = vpop.xlane.xlu1 %2428 }
0x12e4   :  { %v2436_v53 = vadd.f32 1e-05, %v2434_v13  ;;  %v2433_v55 = vmul.f32 0.03125, %v2429_v27 }
0x12e6   :  { %3207 = vrsqrt.f32 %v2436_v53  ;;  %v2435_v5 = vadd.f32 1e-05, %v2433_v55 }
0x12e8   :  { %3209 = vrsqrt.f32 %v2435_v5 }
0x12f3   :  { %v3208_v50 = vpop.eup %3207 }
0x12f4   :  { %v2440_v29 = vmul.f32 %v3208_v50, %v2424_v51 }
0x12f5   :  { %v3210_v24 = vpop.eup %3209 }
0x12f6   :  { %v2439_v12 = vmul.f32 %v3210_v24, %v2423_v21  ;;  %v2448_v35 = vmul.f32 %v2692_v62, %v2440_v29 }
0x12f8   :  { %v2447_v47 = vmul.f32 %v2692_v62, %v2439_v12  ;;  %v2456_v59 = vadd.f32 %v2693_v17, %v2448_v35 }
0x12fa   :  { %v2455_v2 = vadd.f32 %v2693_v17, %v2447_v47 }
0x12fc   :  { %3042 = vmatprep.mubr.msk.f32.mxu0 %vm206_vm1, %v2455_v2 }
0x12fd   :  { %3043 = vmatmul.mubr.msk.f32.vlgmr.msra.gmra.mxu0 %vm206_vm1, %v2456_v59 }
0x13bd   :  { %v3044_v19 = vpop.f32.mrf.mxu0 }
0x13be   :  { %v2546_v3 = vadd.f32 %v3044_v19, %v2694_v6 }
0x13bf   :  { %v2540_v44 = vpop.f32.mrf.mxu0 }
0x13c0   :  { %v2550_v16 = vadd.f32 %v3243_v20, %v2546_v3  ;;  %v2541_v26 = vadd.f32 %v2694_v6, %v2540_v44 }
0x13c2   :  { %2552 = vst.msk [vmem:[#allocation5 + $0x8] sm:$0xff] %vm86_vm0, %v2550_v16  ;;  %v2549_v54 = vadd.f32 %v3244_v0, %v2541_v26 }
0x13c4   :  { %2551 = vst.msk [vmem:[#allocation5] sm:$0xff] %vm86_vm0, %v2549_v54 }
0x13c5   :  { %3276 = shalt.err (!%p3273_p9)
}
0x13c6   :  { %s3293_s10 = smov 128   ;;  %s3294_s30 = smov 8  }
0x13c7   :  { %2564 = dma.vmem_to_hbm [thread:$0]  %s2559_s4, 256, %s4419_s19, [#allocation4], %s3293_s10, %s3293_s10, %s3294_s30  }
0x13c8   :  { %3287 = dma.done.wait [#allocation4], 256  }
0x13c9   :  { %3288 = vsyncadd [#allocation4], 4294967040 }
0x13ca   :  { %2568 = vsyncpa [#allocation3], 1 }
0x13cb   :  { %2569 = vsyncpa [#allocation4], 1 }

</bundles_post_ra>
